<compile_context>
chip_gen: v5e
topology: v5e:2x2
jax: 0.10.0
libtpu: 0.0.40
codegen_flags: <defaults>
</compile_context>

<pallas_src>
import functools
import math

import jax
import jax.numpy as jnp
from jax.experimental import pallas as pl
from jax.experimental.pallas import tpu as pltpu


def _round_up(x, m):
    return (x + m - 1) // m * m


def _gate_stride(H):
    # contiguous gates when 4H is a lane multiple, else pad each gate to 128
    return H if (4 * H) % 128 == 0 else _round_up(H, 128)


# ---------------------------------------------------------------------------
# Per-layer kernel: grid = (direction, time-chunk), streamed x / out.
# ---------------------------------------------------------------------------
def _bilstm_dir_kernel(x_ref, wih_ref, whh_ref, b_ref, lens_ref,
                       out_ref, h_out_ref, c_out_ref, xproj_ref,
                       *, C, T_pad, unroll):
    """
    x_ref:     (S, C, B, F)   chunk of inputs (S source slabs: 1 or 2)
    wih_ref:   (S, F, 4Hg)    this direction's input weights (transposed)
    whh_ref:   (Hg, 4Hg)      this direction's recurrent weights (transposed)
    b_ref:     (1, 4Hg)       b_ih + b_hh for this direction
    lens_ref:  (B, Hg) int32  per-row sequence length (lane-broadcast)
    out_ref:   (C, B, Hg)     per-timestep hidden for this chunk / direction
    h_out_ref, c_out_ref: (B, Hg)  resident final state (carried across chunks)
    xproj_ref: (C, B, 4Hg)    VMEM scratch: per-chunk hoisted input projection
    """
    d = pl.program_id(0)          # 0 = forward, 1 = backward
    c_idx = pl.program_id(1)      # chunk counter along this direction's walk
    S, _, B, F = x_ref.shape
    G = xproj_ref.shape[-1]       # 4 * Hg
    Hg = G // 4

    # ---- per-chunk hoisted input projection: one MXU matmul per source slab
    proj = b_ref[...].astype(jnp.float32)                       # (1, G) broadcast
    for s in range(S):                                          # S is static (1 or 2)
        proj = proj + jnp.dot(x_ref[s].reshape(C * B, F), wih_ref[s],
                              preferred_element_type=jnp.float32)
    xproj_ref[...] = proj.reshape(C, B, G)

    # ---- init the recurrent state at the first chunk of each direction ----
    @pl.when(c_idx == 0)
    def _init():
        h_out_ref[...] = jnp.zeros_like(h_out_ref)
        c_out_ref[...] = jnp.zeros_like(c_out_ref)

    lens_v = lens_ref[...]                                      # (B, Hg) int32
    whh = whh_ref[...]                                          # (Hg, G)
    base = c_idx * C

    def step(i, carry):
        h_prev, c_prev = carry                                  # (B, Hg) f32
        li = (1 - d) * i + d * (C - 1 - i)                      # index inside chunk
        u = base + i                                            # steps done so far
        t = (1 - d) * u + d * (T_pad - 1 - u)                   # global timestep

        # Recurrent matmul — the only true serial dependency (per direction).
        rec = jnp.dot(h_prev.astype(whh.dtype), whh,
                      preferred_element_type=jnp.float32)       # (B, G)
        g = rec + xproj_ref[li]

        i_g = jax.nn.sigmoid(g[:, 0 * Hg:1 * Hg])               # PyTorch order i,f,g,o
        f_g = jax.nn.sigmoid(g[:, 1 * Hg:2 * Hg])
        g_g = jnp.tanh(g[:, 2 * Hg:3 * Hg])
        o_g = jax.nn.sigmoid(g[:, 3 * Hg:4 * Hg])
        c_new = f_g * c_prev + i_g * g_g
        h_new = o_g * jnp.tanh(c_new)

        # Packed-sequence semantics: zero outputs / frozen state past len[b].
        mask = t < lens_v                                       # (B, Hg) bool
        out_ref[li] = jnp.where(mask, h_new, 0.0).astype(out_ref.dtype)
        return (jnp.where(mask, h_new, h_prev),
                jnp.where(mask, c_new, c_prev))

    h_fin, c_fin = jax.lax.fori_loop(
        0, C, step, (h_out_ref[...], c_out_ref[...]), unroll=unroll)
    h_out_ref[...] = h_fin
    c_out_ref[...] = c_fin


def _bilstm_layer(x, lens_b, wih, whh, bias, *, chunk):
    """x: (S, T_pad, B_pad, F).  Returns (out (2,T_pad,B_pad,Hg), h, c)."""
    S, T_pad, B_pad, F = x.shape
    _, Hg, G = whh.shape
    act_dtype = x.dtype
    C = chunk
    NC = T_pad // C
    unroll = C if C <= 8 else 4

    def tmap(d, c):                 # chunk -> time-block index (reversed for bwd)
        return (1 - d) * c + d * (NC - 1 - c)

    # explicit VMEM budget: double-buffered streaming blocks + resident weights
    xb = jnp.dtype(act_dtype).itemsize
    est = (2 * S * C * B_pad * F * xb                              # x chunks
           + 2 * C * B_pad * Hg * xb                               # out chunks
           + 2 * S * F * G * jnp.dtype(wih.dtype).itemsize         # W_ih
           + 2 * Hg * G * jnp.dtype(whh.dtype).itemsize            # W_hh
           + 2 * (G * 4 + B_pad * Hg * 4)                          # bias + lens
           + 2 * 2 * B_pad * Hg * 4                                # h_out / c_out
           + 2 * C * B_pad * G * 4)                                # xproj + temps
    vmem_limit = int(min(64 * 1024 * 1024, max(32 * 1024 * 1024, 2 * est)))

    kernel = functools.partial(_bilstm_dir_kernel, C=C, T_pad=T_pad, unroll=unroll)
    return pl.pallas_call(
        kernel,
        grid=(2, NC),
        in_specs=[
            pl.BlockSpec((S, C, B_pad, F), lambda d, c: (0, tmap(d, c), 0, 0)),
            pl.BlockSpec((None, S, F, G), lambda d, c: (d, 0, 0, 0)),
            pl.BlockSpec((None, Hg, G), lambda d, c: (d, 0, 0)),
            pl.BlockSpec((None, 1, G), lambda d, c: (d, 0, 0)),
            pl.BlockSpec((B_pad, Hg), lambda d, c: (0, 0)),
        ],
        out_specs=(
            pl.BlockSpec((None, C, B_pad, Hg), lambda d, c: (d, tmap(d, c), 0, 0)),
            pl.BlockSpec((None, B_pad, Hg), lambda d, c: (d, 0, 0)),
            pl.BlockSpec((None, B_pad, Hg), lambda d, c: (d, 0, 0)),
        ),
        out_shape=(
            jax.ShapeDtypeStruct((2, T_pad, B_pad, Hg), act_dtype),
            jax.ShapeDtypeStruct((2, B_pad, Hg), jnp.float32),
            jax.ShapeDtypeStruct((2, B_pad, Hg), jnp.float32),
        ),
        scratch_shapes=[pltpu.VMEM((C, B_pad, G), jnp.float32)],
        compiler_params=pltpu.CompilerParams(
            dimension_semantics=("parallel", "arbitrary"),
            vmem_limit_bytes=vmem_limit,
        ),
    )(x, wih, whh, bias, lens_b)


# ---------------------------------------------------------------------------
# Fused (h, c) projection: single lane-dense matmul with block-diag weights.
# ---------------------------------------------------------------------------
def _linear_kernel(x_ref, w_ref, b_ref, o_ref):
    o_ref[...] = jnp.dot(x_ref[...], w_ref[...],
                         preferred_element_type=jnp.float32) + b_ref[...]


def fused_linear(x, w, b):
    M = x.shape[0]
    N = w.shape[1]
    return pl.pallas_call(
        _linear_kernel,
        out_shape=jax.ShapeDtypeStruct((M, N), jnp.float32),
    )(x, w, b)


# ---------------------------------------------------------------------------
# One-time weight packing (hoisted out of the forward pass).
# ---------------------------------------------------------------------------
def _place_gates_t(w, H, Hg):
    """w: (4H, K) PyTorch weight -> (K, 4Hg), each gate block at column k*Hg."""
    K = w.shape[1]
    out = jnp.zeros((K, 4 * Hg), jnp.float32)
    for k in range(4):
        out = out.at[:, k * Hg:k * Hg + H].set(w[k * H:(k + 1) * H, :].T)
    return out


def _place_gates_vec(v, H, Hg):
    out = jnp.zeros((4 * Hg,), jnp.float32)
    for k in range(4):
        out = out.at[k * Hg:k * Hg + H].set(v[k * H:(k + 1) * H])
    return out


def pack_params(params, embedding_dim, hidden, num_layers, proj,
                act_dtype=jnp.bfloat16, rec_dtype=jnp.float32):
    H = hidden
    Hg = _gate_stride(H)
    D_pad = _round_up(embedding_dim, 128)
    layers = []
    for layer in range(num_layers):
        raw = params["lstm"][layer]
        if layer == 0:
            S, F = 1, D_pad
            col_src = [(0, embedding_dim)]
        else:
            S, F = 2, Hg
            col_src = [(0, H), (H, H)]          # prev-layer fwd half | bwd half
        wih = jnp.zeros((2, S, F, 4 * Hg), jnp.float32)
        whh = jnp.zeros((2, Hg, 4 * Hg), jnp.float32)
        bias = jnp.zeros((2, 1, 4 * Hg), jnp.float32)
        for d in range(2):
            w_ih, w_hh, b_ih, b_hh = raw[d]
            for s, (c0, n) in enumerate(col_src):
                wih = wih.at[d, s, 0:n, :].set(
                    _place_gates_t(w_ih[:, c0:c0 + n], H, Hg))
            whh = whh.at[d, 0:H, :].set(_place_gates_t(w_hh, H, Hg))
            bias = bias.at[d, 0, :].set(_place_gates_vec(b_ih + b_hh, H, Hg))
        layers.append((wih.astype(act_dtype), whh.astype(rec_dtype), bias))
    packed = {"layers": layers}
    if proj:
        in_f = num_layers * 2 * H
        out_f = 2 * H
        out_pad = _round_up(out_f, 128)
        k2 = _round_up(2 * in_f, 128)
        wh_t, bh = params["h_linear"]
        wc_t, bc = params["c_linear"]
        w_blk = jnp.zeros((k2, 2 * out_pad), jnp.float32)
        w_blk = w_blk.at[0:in_f, 0:out_f].set(wh_t)
        w_blk = w_blk.at[in_f:2 * in_f, out_pad:out_pad + out_f].set(wc_t)
        b_blk = jnp.zeros((1, 2 * out_pad), jnp.float32)
        b_blk = b_blk.at[0, 0:out_f].set(bh)
        b_blk = b_blk.at[0, out_pad:out_pad + out_f].set(bc)
        packed["proj"] = (w_blk, b_blk)
    return packed


# ---------------------------------------------------------------------------
# Public forward — mirrors BiLSTMRNNEncoder.forward (eval mode).
# ---------------------------------------------------------------------------
def bilstm_encoder_forward(xs, x_lens, packed, hidden, num_layers,
                           total_length, proj, time_chunk=64):
    B, T, D = xs.shape
    H = hidden
    wih0 = packed["layers"][0][0]
    act_dtype = wih0.dtype
    Hg = wih0.shape[-1] // 4
    D_pad = wih0.shape[2]
    B_pad = _round_up(B, 8)
    C = max(1, min(time_chunk, T))
    T_pad = _round_up(T, C)

    x_tm = jnp.transpose(xs, (1, 0, 2)).astype(act_dtype)            # (T, B, D)
    x_tm = jnp.pad(x_tm, ((0, T_pad - T), (0, B_pad - B), (0, D_pad - D)))
    layer_in = x_tm[None]                                            # (1, T_pad, B_pad, D_pad)

    lens = jnp.zeros((B_pad,), jnp.int32).at[:B].set(x_lens.astype(jnp.int32))
    lens_b = jnp.broadcast_to(lens[:, None], (B_pad, Hg))

    hs, cs = [], []
    for layer in range(num_layers):
        wih, whh, bias = packed["layers"][layer]
        out, h_fin, c_fin = _bilstm_layer(layer_in, lens_b, wih, whh, bias, chunk=C)
        layer_in = out                                               # (2, T_pad, B_pad, Hg)
        hs.append(h_fin[0, :B, 0:H]); cs.append(c_fin[0, :B, 0:H])   # PyTorch order
        hs.append(h_fin[1, :B, 0:H]); cs.append(c_fin[1, :B, 0:H])

    xs_out = jnp.concatenate([layer_in[0, :T, :B, 0:H],
                              layer_in[1, :T, :B, 0:H]], axis=-1)    # (T, B, 2H)
    xs_out = jnp.transpose(xs_out, (1, 0, 2)).astype(jnp.float32)    # (B, T, 2H)
    if T < total_length:                                             # pad_packed_sequence
        xs_out = jnp.pad(xs_out, ((0, 0), (0, total_length - T), (0, 0)))
    # dropout: identity in eval mode

    h = jnp.stack(hs, axis=0)                                        # (2L, B, H)
    c = jnp.stack(cs, axis=0)
    if proj:
        w_blk, b_blk = packed["proj"]
        in_f = num_layers * 2 * H
        out_f = 2 * H
        out_pad = _round_up(out_f, 128)
        k2 = w_blk.shape[0]
        h_cat = jnp.concatenate(hs, axis=1)                          # (B, in_f)
        c_cat = jnp.concatenate(cs, axis=1)
        x_lin = jnp.zeros((B_pad, k2), jnp.float32)
        x_lin = x_lin.at[:B, 0:in_f].set(h_cat)
        x_lin = x_lin.at[:B, in_f:2 * in_f].set(c_cat)
        res = fused_linear(x_lin, w_blk, b_blk)                      # (B_pad, 2*out_pad)
        h = res[:B, 0:out_f][None]                                   # (1, B, 2H)
        c = res[:B, out_pad:out_pad + out_f][None]
    return xs_out, (h, c)


# ---------------------------------------------------------------------------
# Deterministic init matching nn.LSTM / nn.Linear parameter shapes.
# ---------------------------------------------------------------------------
def init_params(key, embedding_dim, hidden, num_layers, proj):
    params = {"lstm": {}}
    bound = 1.0 / math.sqrt(hidden)
    k = key
    for layer in range(num_layers):
        in_dim = embedding_dim if layer == 0 else 2 * hidden
        raw = {}
        for d in range(2):
            k, k1, k2, k3, k4 = jax.random.split(k, 5)
            w_ih = jax.random.uniform(k1, (4 * hidden, in_dim), jnp.float32, -bound, bound)
            w_hh = jax.random.uniform(k2, (4 * hidden, hidden), jnp.float32, -bound, bound)
            b_ih = jax.random.uniform(k3, (4 * hidden,), jnp.float32, -bound, bound)
            b_hh = jax.random.uniform(k4, (4 * hidden,), jnp.float32, -bound, bound)
            raw[d] = (w_ih, w_hh, b_ih, b_hh)
        params["lstm"][layer] = raw
    if proj:
        in_f = num_layers * 2 * hidden
        out_f = 2 * hidden
        lb = 1.0 / math.sqrt(in_f)
        k, k1, k2, k3, k4 = jax.random.split(k, 5)
        params["h_linear"] = (
            jax.random.uniform(k1, (in_f, out_f), jnp.float32, -lb, lb),
            jax.random.uniform(k2, (out_f,), jnp.float32, -lb, lb),
        )
        params["c_linear"] = (
            jax.random.uniform(k3, (in_f, out_f), jnp.float32, -lb, lb),
            jax.random.uniform(k4, (out_f,), jnp.float32, -lb, lb),
        )
    return params


# ---------------------------------------------------------------------------
# Pure-JAX (XLA) reference for correctness checks.
# ---------------------------------------------------------------------------
def lstm_reference(xs, x_lens, params, hidden, num_layers, proj, total_length):
    B, T, D = xs.shape
    H = hidden
    lens = x_lens.astype(jnp.int32)

    def run_dir(x_seq, w_ih, w_hh, b, reverse):
        def step(carry, inp):
            h, c = carry
            x_t, t = inp
            g = x_t @ w_ih.T + h @ w_hh.T + b
            i = jax.nn.sigmoid(g[:, 0:H]); f = jax.nn.sigmoid(g[:, H:2 * H])
            gg = jnp.tanh(g[:, 2 * H:3 * H]); o = jax.nn.sigmoid(g[:, 3 * H:4 * H])
            c_new = f * c + i * gg
            h_new = o * jnp.tanh(c_new)
            m = (t < lens)[:, None]
            return ((jnp.where(m, h_new, h), jnp.where(m, c_new, c)),
                    jnp.where(m, h_new, 0.0))
        ts = jnp.arange(T)
        xi = x_seq[::-1] if reverse else x_seq
        ti = ts[::-1] if reverse else ts
        (hf, cf), outs = jax.lax.scan(
            step, (jnp.zeros((B, H), jnp.float32), jnp.zeros((B, H), jnp.float32)),
            (xi, ti))
        if reverse:
            outs = outs[::-1]
        return outs, hf, cf

    layer_in = jnp.transpose(xs, (1, 0, 2))
    hs, cs = [], []
    for l in range(num_layers):
        outs = []
        for d in range(2):
            w_ih, w_hh, b_ih, b_hh = params["lstm"][l][d]
            o, hf, cf = run_dir(layer_in, w_ih, w_hh, b_ih + b_hh, reverse=(d == 1))
            outs.append(o); hs.append(hf); cs.append(cf)
        layer_in = jnp.concatenate(outs, axis=-1)
    out = jnp.transpose(layer_in, (1, 0, 2))
    if T < total_length:
        out = jnp.pad(out, ((0, 0), (0, total_length - T), (0, 0)))
    h = jnp.stack(hs, 0); c = jnp.stack(cs, 0)
    if proj:
        wh_t, bh = params["h_linear"]; wc_t, bc = params["c_linear"]
        h = (jnp.concatenate(hs, 1) @ wh_t + bh)[None]
        c = (jnp.concatenate(cs, 1) @ wc_t + bc)[None]
    return out, (h, c)


if __name__ == "__main__":
    B, T, D, H, L = 2, 8, 16, 32, 2      # batch, seq(=max_seq_len), emb, hidden, layers
    key = jax.random.PRNGKey(0)
    kx, kp = jax.random.split(key)

    xs = jax.random.normal(kx, (B, T, D), jnp.float32)
    x_lens = jnp.array([8, 5], dtype=jnp.int32)
    params = init_params(kp, D, H, L, proj=True)

    # Pure-JAX reference.
    ref_out, (ref_h, ref_c) = lstm_reference(xs, x_lens, params, H, L, True, T)

    # --- f32 path (exercises multi-chunk streaming): numerics check ---------
    packed32 = pack_params(params, D, H, L, proj=True,
                           act_dtype=jnp.float32, rec_dtype=jnp.float32)
    out32, (h32, c32) = bilstm_encoder_forward(
        xs, x_lens, packed32, hidden=H, num_layers=L, total_length=T,
        proj=True, time_chunk=4)
    jax.block_until_ready((out32, h32, c32))
    assert out32.shape == (B, T, 2 * H)
    assert jnp.allclose(out32, ref_out, atol=5e-3, rtol=5e-3)
    assert jnp.allclose(h32, ref_h, atol=5e-3, rtol=5e-3)
    assert jnp.allclose(c32, ref_c, atol=5e-3, rtol=5e-3)

    # --- bf16 fast path (default): shape / packed-sequence checks -----------
    packed = pack_params(params, D, H, L, proj=True,
                         act_dtype=jnp.bfloat16, rec_dtype=jnp.float32)
    fwd = jax.jit(functools.partial(
        bilstm_encoder_forward, hidden=H, num_layers=L, total_length=T,
        proj=True, time_chunk=64))
    out, (h, c) = fwd(xs, x_lens, packed)
    jax.block_until_ready((out, h, c))
    assert out.shape == (B, T, 2 * H)
    assert h.shape == (1, B, 2 * H) and c.shape == (1, B, 2 * H)
    # padded timesteps must be exactly zero (pad_packed_sequence behaviour)
    assert float(jnp.abs(out[1, 5:]).max()) == 0.0
    assert float(jnp.abs(out - ref_out).max()) < 5e-2   # bf16 tolerance
    print("KERNEL_OK")
</pallas_src>

<mosaic_0001>
module attributes {stable_mosaic.version = 11 : i64} {
  func.func @_bilstm_dir_kernel(%arg0: i32, %arg1: i32, %arg2: memref<1x4x8x128xf32, #tpu.memory_space<vmem>>, %arg3: memref<1x1x128x128xf32, #tpu.memory_space<vmem>>, %arg4: memref<1x32x128xf32, #tpu.memory_space<vmem>>, %arg5: memref<1x1x128xf32, #tpu.memory_space<vmem>>, %arg6: memref<8x32xi32, #tpu.memory_space<vmem>>, %arg7: memref<1x4x8x32xf32, #tpu.memory_space<vmem>>, %arg8: memref<1x8x32xf32, #tpu.memory_space<vmem>>, %arg9: memref<1x8x32xf32, #tpu.memory_space<vmem>>, %arg10: memref<4x8x128xf32, #tpu.memory_space<vmem>>) attributes {dimension_semantics = [#tpu.dimension_semantics<parallel>, #tpu.dimension_semantics<arbitrary>], iteration_bounds = array<i64: 2, 2>, scalar_prefetch = 0 : i64, scratch_operands = 1 : i64, tpu.core_type = #tpu.core_type<tc>, window_params = [{transform_indices = @transform_0, window_bounds = array<i64: 1, 4, 8, 128>}, {transform_indices = @transform_1, window_bounds = array<i64: 1, 1, 128, 128>}, {transform_indices = @transform_2, window_bounds = array<i64: 1, 32, 128>}, {transform_indices = @transform_3, window_bounds = array<i64: 1, 1, 128>}, {pipeline_mode = #tpu.pipeline_mode<synchronous>, transform_indices = @transform_4, window_bounds = array<i64: 8, 32>}, {transform_indices = @transform_5, window_bounds = array<i64: 1, 4, 8, 32>}, {transform_indices = @transform_6, window_bounds = array<i64: 1, 8, 32>}, {transform_indices = @transform_7, window_bounds = array<i64: 1, 8, 32>}]} {
    %c0 = arith.constant 0 : index
    %c0_0 = arith.constant 0 : index
    %c0_1 = arith.constant 0 : index
    %0 = vector.load %arg5[%c0, %c0_0, %c0_1] : memref<1x1x128xf32, #tpu.memory_space<vmem>>, vector<1x1x128xf32>
    %1 = vector.shape_cast %0 : vector<1x1x128xf32> to vector<1x128xf32>
    %c0_2 = arith.constant 0 : index
    %c0_3 = arith.constant 0 : index
    %c0_4 = arith.constant 0 : index
    %c0_5 = arith.constant 0 : index
    %2 = vector.load %arg2[%c0_2, %c0_3, %c0_4, %c0_5] : memref<1x4x8x128xf32, #tpu.memory_space<vmem>>, vector<1x4x8x128xf32>
    %3 = vector.shape_cast %2 : vector<1x4x8x128xf32> to vector<4x8x128xf32>
    %4 = vector.shape_cast %3 : vector<4x8x128xf32> to vector<32x128xf32>
    %c0_6 = arith.constant 0 : index
    %c0_7 = arith.constant 0 : index
    %c0_8 = arith.constant 0 : index
    %c0_9 = arith.constant 0 : index
    %5 = vector.load %arg3[%c0_6, %c0_7, %c0_8, %c0_9] : memref<1x1x128x128xf32, #tpu.memory_space<vmem>>, vector<1x1x128x128xf32>
    %6 = vector.shape_cast %5 : vector<1x1x128x128xf32> to vector<128x128xf32>
    %cst = arith.constant dense<0.000000e+00> : vector<32x128xf32>
    %7 = tpu.matmul %4, %6, %cst {dimension_numbers = #tpu.dot_dimension_numbers<[1], [0], [0], [1], [0, 0, 1, 1], [], []>} : vector<32x128xf32>, vector<128x128xf32>, vector<32x128xf32> -> vector<32x128xf32>
    %8 = vector.broadcast %1 : vector<1x128xf32> to vector<32x128xf32>
    %9 = arith.addf %8, %7 : vector<32x128xf32>
    %10 = vector.shape_cast %9 : vector<32x128xf32> to vector<4x8x128xf32>
    %c0_10 = arith.constant 0 : index
    %c0_11 = arith.constant 0 : index
    %c0_12 = arith.constant 0 : index
    %11 = vector.load %arg10[%c0_10, %c0_11, %c0_12] : memref<4x8x128xf32, #tpu.memory_space<vmem>>, vector<4x8x128xf32>
    tpu.vector_store %arg10[%c0_10, %c0_11, %c0_12], %10 {strides = array<i32>} : memref<4x8x128xf32, #tpu.memory_space<vmem>>, vector<4x8x128xf32>,
    %c0_i32 = arith.constant 0 : i32
    %12 = arith.cmpi eq, %arg1, %c0_i32 : i32
    %13 = arith.extui %12 : i1 to i32
    %c0_i32_13 = arith.constant 0 : i32
    %14 = arith.cmpi ne, %13, %c0_i32_13 : i32
    scf.if %14 {
      %cst_88 = arith.constant 0.000000e+00 : f32
      %233 = vector.broadcast %cst_88 : f32 to vector<8x32xf32>
      %c0_89 = arith.constant 0 : index
      %c0_90 = arith.constant 0 : index
      %c0_91 = arith.constant 0 : index
      %234 = vector.load %arg8[%c0_89, %c0_90, %c0_91] : memref<1x8x32xf32, #tpu.memory_space<vmem>>, vector<1x8x32xf32>
      %235 = vector.shape_cast %234 : vector<1x8x32xf32> to vector<8x32xf32>
      %236 = vector.shape_cast %233 : vector<8x32xf32> to vector<1x8x32xf32>
      tpu.vector_store %arg8[%c0_89, %c0_90, %c0_91], %236 {strides = array<i32>} : memref<1x8x32xf32, #tpu.memory_space<vmem>>, vector<1x8x32xf32>,
      %cst_92 = arith.constant 0.000000e+00 : f32
      %237 = vector.broadcast %cst_92 : f32 to vector<8x32xf32>
      %c0_93 = arith.constant 0 : index
      %c0_94 = arith.constant 0 : index
      %c0_95 = arith.constant 0 : index
      %238 = vector.load %arg9[%c0_93, %c0_94, %c0_95] : memref<1x8x32xf32, #tpu.memory_space<vmem>>, vector<1x8x32xf32>
      %239 = vector.shape_cast %238 : vector<1x8x32xf32> to vector<8x32xf32>
      %240 = vector.shape_cast %237 : vector<8x32xf32> to vector<1x8x32xf32>
      tpu.vector_store %arg9[%c0_93, %c0_94, %c0_95], %240 {strides = array<i32>} : memref<1x8x32xf32, #tpu.memory_space<vmem>>, vector<1x8x32xf32>,
    } else {
    }
    %c0_14 = arith.constant 0 : index
    %c0_15 = arith.constant 0 : index
    %15 = vector.load %arg6[%c0_14, %c0_15] : memref<8x32xi32, #tpu.memory_space<vmem>>, vector<8x32xi32>
    %c0_16 = arith.constant 0 : index
    %c0_17 = arith.constant 0 : index
    %c0_18 = arith.constant 0 : index
    %16 = vector.load %arg4[%c0_16, %c0_17, %c0_18] : memref<1x32x128xf32, #tpu.memory_space<vmem>>, vector<1x32x128xf32>
    %17 = vector.shape_cast %16 : vector<1x32x128xf32> to vector<32x128xf32>
    %c4_i32 = arith.constant 4 : i32
    %18 = arith.muli %arg1, %c4_i32 : i32
    %c0_19 = arith.constant 0 : index
    %c0_20 = arith.constant 0 : index
    %c0_21 = arith.constant 0 : index
    %19 = vector.load %arg8[%c0_19, %c0_20, %c0_21] : memref<1x8x32xf32, #tpu.memory_space<vmem>>, vector<1x8x32xf32>
    %20 = vector.shape_cast %19 : vector<1x8x32xf32> to vector<8x32xf32>
    %c0_22 = arith.constant 0 : index
    %c0_23 = arith.constant 0 : index
    %c0_24 = arith.constant 0 : index
    %21 = vector.load %arg9[%c0_22, %c0_23, %c0_24] : memref<1x8x32xf32, #tpu.memory_space<vmem>>, vector<1x8x32xf32>
    %22 = vector.shape_cast %21 : vector<1x8x32xf32> to vector<8x32xf32>
    %c0_i32_25 = arith.constant 0 : i32
    %c1_i32 = arith.constant 1 : i32
    %23 = arith.subi %c1_i32, %arg0 : i32
    %24 = arith.muli %23, %c0_i32_25 : i32
    %c3_i32 = arith.constant 3 : i32
    %25 = arith.subi %c3_i32, %c0_i32_25 : i32
    %26 = arith.muli %arg0, %25 : i32
    %27 = arith.addi %24, %26 : i32
    %28 = arith.addi %18, %c0_i32_25 : i32
    %c1_i32_26 = arith.constant 1 : i32
    %29 = arith.subi %c1_i32_26, %arg0 : i32
    %30 = arith.muli %29, %28 : i32
    %c7_i32 = arith.constant 7 : i32
    %31 = arith.subi %c7_i32, %28 : i32
    %32 = arith.muli %arg0, %31 : i32
    %33 = arith.addi %30, %32 : i32
    %cst_27 = arith.constant dense<0.000000e+00> : vector<8x128xf32>
    %34 = tpu.matmul %20, %17, %cst_27 {dimension_numbers = #tpu.dot_dimension_numbers<[1], [0], [0], [1], [0, 0, 1, 1], [], []>} : vector<8x32xf32>, vector<32x128xf32>, vector<8x128xf32> -> vector<8x128xf32>
    %35 = arith.index_cast %27 : i32 to index
    %c0_28 = arith.constant 0 : index
    %c0_29 = arith.constant 0 : index
    %36 = vector.load %arg10[%35, %c0_28, %c0_29] : memref<4x8x128xf32, #tpu.memory_space<vmem>>, vector<1x8x128xf32>
    %37 = vector.shape_cast %36 : vector<1x8x128xf32> to vector<8x128xf32>
    %38 = arith.addf %34, %37 : vector<8x128xf32>
    %39 = vector.extract_strided_slice %38 {offsets = [0, 0], sizes = [8, 32], strides = [1, 1]} : vector<8x128xf32> to vector<8x32xf32>
    %40 = arith.negf %39 : vector<8x32xf32>
    %41 = math.exp %40 : vector<8x32xf32>
    %cst_30 = arith.constant 1.000000e+00 : f32
    %42 = vector.broadcast %cst_30 : f32 to vector<8x32xf32>
    %43 = arith.addf %42, %41 : vector<8x32xf32>
    %44 = arith.divf %42, %43 : vector<8x32xf32>
    %45 = vector.extract_strided_slice %38 {offsets = [0, 32], sizes = [8, 32], strides = [1, 1]} : vector<8x128xf32> to vector<8x32xf32>
    %46 = arith.negf %45 : vector<8x32xf32>
    %47 = math.exp %46 : vector<8x32xf32>
    %cst_31 = arith.constant 1.000000e+00 : f32
    %48 = vector.broadcast %cst_31 : f32 to vector<8x32xf32>
    %49 = arith.addf %48, %47 : vector<8x32xf32>
    %50 = arith.divf %48, %49 : vector<8x32xf32>
    %51 = vector.extract_strided_slice %38 {offsets = [0, 64], sizes = [8, 32], strides = [1, 1]} : vector<8x128xf32> to vector<8x32xf32>
    %52 = math.tanh %51 : vector<8x32xf32>
    %53 = vector.extract_strided_slice %38 {offsets = [0, 96], sizes = [8, 32], strides = [1, 1]} : vector<8x128xf32> to vector<8x32xf32>
    %54 = arith.negf %53 : vector<8x32xf32>
    %55 = math.exp %54 : vector<8x32xf32>
    %cst_32 = arith.constant 1.000000e+00 : f32
    %56 = vector.broadcast %cst_32 : f32 to vector<8x32xf32>
    %57 = arith.addf %56, %55 : vector<8x32xf32>
    %58 = arith.divf %56, %57 : vector<8x32xf32>
    %59 = arith.mulf %50, %22 : vector<8x32xf32>
    %60 = arith.mulf %44, %52 : vector<8x32xf32>
    %61 = arith.addf %59, %60 : vector<8x32xf32>
    %62 = math.tanh %61 : vector<8x32xf32>
    %63 = arith.mulf %58, %62 : vector<8x32xf32>
    %64 = vector.broadcast %33 : i32 to vector<8x32xi32>
    %65 = arith.cmpi slt, %64, %15 : vector<8x32xi32>
    %cst_33 = arith.constant 0.000000e+00 : f32
    %66 = vector.broadcast %cst_33 : f32 to vector<8x32xf32>
    %67 = arith.select %65, %63, %66 : vector<8x32xi1>, vector<8x32xf32>
    %c0_34 = arith.constant 0 : index
    %68 = arith.index_cast %27 : i32 to index
    %c0_35 = arith.constant 0 : index
    %c0_36 = arith.constant 0 : index
    %69 = vector.load %arg7[%c0_34, %68, %c0_35, %c0_36] : memref<1x4x8x32xf32, #tpu.memory_space<vmem>>, vector<1x1x8x32xf32>
    %70 = vector.shape_cast %69 : vector<1x1x8x32xf32> to vector<8x32xf32>
    %71 = vector.shape_cast %67 : vector<8x32xf32> to vector<1x1x8x32xf32>
    tpu.vector_store %arg7[%c0_34, %68, %c0_35, %c0_36], %71 {strides = array<i32>} : memref<1x4x8x32xf32, #tpu.memory_space<vmem>>, vector<1x1x8x32xf32>,
    %72 = arith.select %65, %63, %20 : vector<8x32xi1>, vector<8x32xf32>
    %73 = arith.select %65, %61, %22 : vector<8x32xi1>, vector<8x32xf32>
    %c1_i32_37 = arith.constant 1 : i32
    %c1_i32_38 = arith.constant 1 : i32
    %74 = arith.subi %c1_i32_38, %arg0 : i32
    %75 = arith.muli %74, %c1_i32_37 : i32
    %c3_i32_39 = arith.constant 3 : i32
    %76 = arith.subi %c3_i32_39, %c1_i32_37 : i32
    %77 = arith.muli %arg0, %76 : i32
    %78 = arith.addi %75, %77 : i32
    %79 = arith.addi %18, %c1_i32_37 : i32
    %c1_i32_40 = arith.constant 1 : i32
    %80 = arith.subi %c1_i32_40, %arg0 : i32
    %81 = arith.muli %80, %79 : i32
    %c7_i32_41 = arith.constant 7 : i32
    %82 = arith.subi %c7_i32_41, %79 : i32
    %83 = arith.muli %arg0, %82 : i32
    %84 = arith.addi %81, %83 : i32
    %cst_42 = arith.constant dense<0.000000e+00> : vector<8x128xf32>
    %85 = tpu.matmul %72, %17, %cst_42 {dimension_numbers = #tpu.dot_dimension_numbers<[1], [0], [0], [1], [0, 0, 1, 1], [], []>} : vector<8x32xf32>, vector<32x128xf32>, vector<8x128xf32> -> vector<8x128xf32>
    %86 = arith.index_cast %78 : i32 to index
    %c0_43 = arith.constant 0 : index
    %c0_44 = arith.constant 0 : index
    %87 = vector.load %arg10[%86, %c0_43, %c0_44] : memref<4x8x128xf32, #tpu.memory_space<vmem>>, vector<1x8x128xf32>
    %88 = vector.shape_cast %87 : vector<1x8x128xf32> to vector<8x128xf32>
    %89 = arith.addf %85, %88 : vector<8x128xf32>
    %90 = vector.extract_strided_slice %89 {offsets = [0, 0], sizes = [8, 32], strides = [1, 1]} : vector<8x128xf32> to vector<8x32xf32>
    %91 = arith.negf %90 : vector<8x32xf32>
    %92 = math.exp %91 : vector<8x32xf32>
    %cst_45 = arith.constant 1.000000e+00 : f32
    %93 = vector.broadcast %cst_45 : f32 to vector<8x32xf32>
    %94 = arith.addf %93, %92 : vector<8x32xf32>
    %95 = arith.divf %93, %94 : vector<8x32xf32>
    %96 = vector.extract_strided_slice %89 {offsets = [0, 32], sizes = [8, 32], strides = [1, 1]} : vector<8x128xf32> to vector<8x32xf32>
    %97 = arith.negf %96 : vector<8x32xf32>
    %98 = math.exp %97 : vector<8x32xf32>
    %cst_46 = arith.constant 1.000000e+00 : f32
    %99 = vector.broadcast %cst_46 : f32 to vector<8x32xf32>
    %100 = arith.addf %99, %98 : vector<8x32xf32>
    %101 = arith.divf %99, %100 : vector<8x32xf32>
    %102 = vector.extract_strided_slice %89 {offsets = [0, 64], sizes = [8, 32], strides = [1, 1]} : vector<8x128xf32> to vector<8x32xf32>
    %103 = math.tanh %102 : vector<8x32xf32>
    %104 = vector.extract_strided_slice %89 {offsets = [0, 96], sizes = [8, 32], strides = [1, 1]} : vector<8x128xf32> to vector<8x32xf32>
    %105 = arith.negf %104 : vector<8x32xf32>
    %106 = math.exp %105 : vector<8x32xf32>
    %cst_47 = arith.constant 1.000000e+00 : f32
    %107 = vector.broadcast %cst_47 : f32 to vector<8x32xf32>
    %108 = arith.addf %107, %106 : vector<8x32xf32>
    %109 = arith.divf %107, %108 : vector<8x32xf32>
    %110 = arith.mulf %101, %73 : vector<8x32xf32>
    %111 = arith.mulf %95, %103 : vector<8x32xf32>
    %112 = arith.addf %110, %111 : vector<8x32xf32>
    %113 = math.tanh %112 : vector<8x32xf32>
    %114 = arith.mulf %109, %113 : vector<8x32xf32>
    %115 = vector.broadcast %84 : i32 to vector<8x32xi32>
    %116 = arith.cmpi slt, %115, %15 : vector<8x32xi32>
    %cst_48 = arith.constant 0.000000e+00 : f32
    %117 = vector.broadcast %cst_48 : f32 to vector<8x32xf32>
    %118 = arith.select %116, %114, %117 : vector<8x32xi1>, vector<8x32xf32>
    %c0_49 = arith.constant 0 : index
    %119 = arith.index_cast %78 : i32 to index
    %c0_50 = arith.constant 0 : index
    %c0_51 = arith.constant 0 : index
    %120 = vector.load %arg7[%c0_49, %119, %c0_50, %c0_51] : memref<1x4x8x32xf32, #tpu.memory_space<vmem>>, vector<1x1x8x32xf32>
    %121 = vector.shape_cast %120 : vector<1x1x8x32xf32> to vector<8x32xf32>
    %122 = vector.shape_cast %118 : vector<8x32xf32> to vector<1x1x8x32xf32>
    tpu.vector_store %arg7[%c0_49, %119, %c0_50, %c0_51], %122 {strides = array<i32>} : memref<1x4x8x32xf32, #tpu.memory_space<vmem>>, vector<1x1x8x32xf32>,
    %123 = arith.select %116, %114, %72 : vector<8x32xi1>, vector<8x32xf32>
    %124 = arith.select %116, %112, %73 : vector<8x32xi1>, vector<8x32xf32>
    %c2_i32 = arith.constant 2 : i32
    %c1_i32_52 = arith.constant 1 : i32
    %125 = arith.subi %c1_i32_52, %arg0 : i32
    %126 = arith.muli %125, %c2_i32 : i32
    %c3_i32_53 = arith.constant 3 : i32
    %127 = arith.subi %c3_i32_53, %c2_i32 : i32
    %128 = arith.muli %arg0, %127 : i32
    %129 = arith.addi %126, %128 : i32
    %130 = arith.addi %18, %c2_i32 : i32
    %c1_i32_54 = arith.constant 1 : i32
    %131 = arith.subi %c1_i32_54, %arg0 : i32
    %132 = arith.muli %131, %130 : i32
    %c7_i32_55 = arith.constant 7 : i32
    %133 = arith.subi %c7_i32_55, %130 : i32
    %134 = arith.muli %arg0, %133 : i32
    %135 = arith.addi %132, %134 : i32
    %cst_56 = arith.constant dense<0.000000e+00> : vector<8x128xf32>
    %136 = tpu.matmul %123, %17, %cst_56 {dimension_numbers = #tpu.dot_dimension_numbers<[1], [0], [0], [1], [0, 0, 1, 1], [], []>} : vector<8x32xf32>, vector<32x128xf32>, vector<8x128xf32> -> vector<8x128xf32>
    %137 = arith.index_cast %129 : i32 to index
    %c0_57 = arith.constant 0 : index
    %c0_58 = arith.constant 0 : index
    %138 = vector.load %arg10[%137, %c0_57, %c0_58] : memref<4x8x128xf32, #tpu.memory_space<vmem>>, vector<1x8x128xf32>
    %139 = vector.shape_cast %138 : vector<1x8x128xf32> to vector<8x128xf32>
    %140 = arith.addf %136, %139 : vector<8x128xf32>
    %141 = vector.extract_strided_slice %140 {offsets = [0, 0], sizes = [8, 32], strides = [1, 1]} : vector<8x128xf32> to vector<8x32xf32>
    %142 = arith.negf %141 : vector<8x32xf32>
    %143 = math.exp %142 : vector<8x32xf32>
    %cst_59 = arith.constant 1.000000e+00 : f32
    %144 = vector.broadcast %cst_59 : f32 to vector<8x32xf32>
    %145 = arith.addf %144, %143 : vector<8x32xf32>
    %146 = arith.divf %144, %145 : vector<8x32xf32>
    %147 = vector.extract_strided_slice %140 {offsets = [0, 32], sizes = [8, 32], strides = [1, 1]} : vector<8x128xf32> to vector<8x32xf32>
    %148 = arith.negf %147 : vector<8x32xf32>
    %149 = math.exp %148 : vector<8x32xf32>
    %cst_60 = arith.constant 1.000000e+00 : f32
    %150 = vector.broadcast %cst_60 : f32 to vector<8x32xf32>
    %151 = arith.addf %150, %149 : vector<8x32xf32>
    %152 = arith.divf %150, %151 : vector<8x32xf32>
    %153 = vector.extract_strided_slice %140 {offsets = [0, 64], sizes = [8, 32], strides = [1, 1]} : vector<8x128xf32> to vector<8x32xf32>
    %154 = math.tanh %153 : vector<8x32xf32>
    %155 = vector.extract_strided_slice %140 {offsets = [0, 96], sizes = [8, 32], strides = [1, 1]} : vector<8x128xf32> to vector<8x32xf32>
    %156 = arith.negf %155 : vector<8x32xf32>
    %157 = math.exp %156 : vector<8x32xf32>
    %cst_61 = arith.constant 1.000000e+00 : f32
    %158 = vector.broadcast %cst_61 : f32 to vector<8x32xf32>
    %159 = arith.addf %158, %157 : vector<8x32xf32>
    %160 = arith.divf %158, %159 : vector<8x32xf32>
    %161 = arith.mulf %152, %124 : vector<8x32xf32>
    %162 = arith.mulf %146, %154 : vector<8x32xf32>
    %163 = arith.addf %161, %162 : vector<8x32xf32>
    %164 = math.tanh %163 : vector<8x32xf32>
    %165 = arith.mulf %160, %164 : vector<8x32xf32>
    %166 = vector.broadcast %135 : i32 to vector<8x32xi32>
    %167 = arith.cmpi slt, %166, %15 : vector<8x32xi32>
    %cst_62 = arith.constant 0.000000e+00 : f32
    %168 = vector.broadcast %cst_62 : f32 to vector<8x32xf32>
    %169 = arith.select %167, %165, %168 : vector<8x32xi1>, vector<8x32xf32>
    %c0_63 = arith.constant 0 : index
    %170 = arith.index_cast %129 : i32 to index
    %c0_64 = arith.constant 0 : index
    %c0_65 = arith.constant 0 : index
    %171 = vector.load %arg7[%c0_63, %170, %c0_64, %c0_65] : memref<1x4x8x32xf32, #tpu.memory_space<vmem>>, vector<1x1x8x32xf32>
    %172 = vector.shape_cast %171 : vector<1x1x8x32xf32> to vector<8x32xf32>
    %173 = vector.shape_cast %169 : vector<8x32xf32> to vector<1x1x8x32xf32>
    tpu.vector_store %arg7[%c0_63, %170, %c0_64, %c0_65], %173 {strides = array<i32>} : memref<1x4x8x32xf32, #tpu.memory_space<vmem>>, vector<1x1x8x32xf32>,
    %174 = arith.select %167, %165, %123 : vector<8x32xi1>, vector<8x32xf32>
    %175 = arith.select %167, %163, %124 : vector<8x32xi1>, vector<8x32xf32>
    %c3_i32_66 = arith.constant 3 : i32
    %c1_i32_67 = arith.constant 1 : i32
    %176 = arith.subi %c1_i32_67, %arg0 : i32
    %177 = arith.muli %176, %c3_i32_66 : i32
    %c3_i32_68 = arith.constant 3 : i32
    %178 = arith.subi %c3_i32_68, %c3_i32_66 : i32
    %179 = arith.muli %arg0, %178 : i32
    %180 = arith.addi %177, %179 : i32
    %181 = arith.addi %18, %c3_i32_66 : i32
    %c1_i32_69 = arith.constant 1 : i32
    %182 = arith.subi %c1_i32_69, %arg0 : i32
    %183 = arith.muli %182, %181 : i32
    %c7_i32_70 = arith.constant 7 : i32
    %184 = arith.subi %c7_i32_70, %181 : i32
    %185 = arith.muli %arg0, %184 : i32
    %186 = arith.addi %183, %185 : i32
    %cst_71 = arith.constant dense<0.000000e+00> : vector<8x128xf32>
    %187 = tpu.matmul %174, %17, %cst_71 {dimension_numbers = #tpu.dot_dimension_numbers<[1], [0], [0], [1], [0, 0, 1, 1], [], []>} : vector<8x32xf32>, vector<32x128xf32>, vector<8x128xf32> -> vector<8x128xf32>
    %188 = arith.index_cast %180 : i32 to index
    %c0_72 = arith.constant 0 : index
    %c0_73 = arith.constant 0 : index
    %189 = vector.load %arg10[%188, %c0_72, %c0_73] : memref<4x8x128xf32, #tpu.memory_space<vmem>>, vector<1x8x128xf32>
    %190 = vector.shape_cast %189 : vector<1x8x128xf32> to vector<8x128xf32>
    %191 = arith.addf %187, %190 : vector<8x128xf32>
    %192 = vector.extract_strided_slice %191 {offsets = [0, 0], sizes = [8, 32], strides = [1, 1]} : vector<8x128xf32> to vector<8x32xf32>
    %193 = arith.negf %192 : vector<8x32xf32>
    %194 = math.exp %193 : vector<8x32xf32>
    %cst_74 = arith.constant 1.000000e+00 : f32
    %195 = vector.broadcast %cst_74 : f32 to vector<8x32xf32>
    %196 = arith.addf %195, %194 : vector<8x32xf32>
    %197 = arith.divf %195, %196 : vector<8x32xf32>
    %198 = vector.extract_strided_slice %191 {offsets = [0, 32], sizes = [8, 32], strides = [1, 1]} : vector<8x128xf32> to vector<8x32xf32>
    %199 = arith.negf %198 : vector<8x32xf32>
    %200 = math.exp %199 : vector<8x32xf32>
    %cst_75 = arith.constant 1.000000e+00 : f32
    %201 = vector.broadcast %cst_75 : f32 to vector<8x32xf32>
    %202 = arith.addf %201, %200 : vector<8x32xf32>
    %203 = arith.divf %201, %202 : vector<8x32xf32>
    %204 = vector.extract_strided_slice %191 {offsets = [0, 64], sizes = [8, 32], strides = [1, 1]} : vector<8x128xf32> to vector<8x32xf32>
    %205 = math.tanh %204 : vector<8x32xf32>
    %206 = vector.extract_strided_slice %191 {offsets = [0, 96], sizes = [8, 32], strides = [1, 1]} : vector<8x128xf32> to vector<8x32xf32>
    %207 = arith.negf %206 : vector<8x32xf32>
    %208 = math.exp %207 : vector<8x32xf32>
    %cst_76 = arith.constant 1.000000e+00 : f32
    %209 = vector.broadcast %cst_76 : f32 to vector<8x32xf32>
    %210 = arith.addf %209, %208 : vector<8x32xf32>
    %211 = arith.divf %209, %210 : vector<8x32xf32>
    %212 = arith.mulf %203, %175 : vector<8x32xf32>
    %213 = arith.mulf %197, %205 : vector<8x32xf32>
    %214 = arith.addf %212, %213 : vector<8x32xf32>
    %215 = math.tanh %214 : vector<8x32xf32>
    %216 = arith.mulf %211, %215 : vector<8x32xf32>
    %217 = vector.broadcast %186 : i32 to vector<8x32xi32>
    %218 = arith.cmpi slt, %217, %15 : vector<8x32xi32>
    %cst_77 = arith.constant 0.000000e+00 : f32
    %219 = vector.broadcast %cst_77 : f32 to vector<8x32xf32>
    %220 = arith.select %218, %216, %219 : vector<8x32xi1>, vector<8x32xf32>
    %c0_78 = arith.constant 0 : index
    %221 = arith.index_cast %180 : i32 to index
    %c0_79 = arith.constant 0 : index
    %c0_80 = arith.constant 0 : index
    %222 = vector.load %arg7[%c0_78, %221, %c0_79, %c0_80] : memref<1x4x8x32xf32, #tpu.memory_space<vmem>>, vector<1x1x8x32xf32>
    %223 = vector.shape_cast %222 : vector<1x1x8x32xf32> to vector<8x32xf32>
    %224 = vector.shape_cast %220 : vector<8x32xf32> to vector<1x1x8x32xf32>
    tpu.vector_store %arg7[%c0_78, %221, %c0_79, %c0_80], %224 {strides = array<i32>} : memref<1x4x8x32xf32, #tpu.memory_space<vmem>>, vector<1x1x8x32xf32>,
    %225 = arith.select %218, %216, %174 : vector<8x32xi1>, vector<8x32xf32>
    %226 = arith.select %218, %214, %175 : vector<8x32xi1>, vector<8x32xf32>
    %c4_i32_81 = arith.constant 4 : i32
    %c0_82 = arith.constant 0 : index
    %c0_83 = arith.constant 0 : index
    %c0_84 = arith.constant 0 : index
    %227 = vector.load %arg8[%c0_82, %c0_83, %c0_84] : memref<1x8x32xf32, #tpu.memory_space<vmem>>, vector<1x8x32xf32>
    %228 = vector.shape_cast %227 : vector<1x8x32xf32> to vector<8x32xf32>
    %229 = vector.shape_cast %225 : vector<8x32xf32> to vector<1x8x32xf32>
    tpu.vector_store %arg8[%c0_82, %c0_83, %c0_84], %229 {strides = array<i32>} : memref<1x8x32xf32, #tpu.memory_space<vmem>>, vector<1x8x32xf32>,
    %c0_85 = arith.constant 0 : index
    %c0_86 = arith.constant 0 : index
    %c0_87 = arith.constant 0 : index
    %230 = vector.load %arg9[%c0_85, %c0_86, %c0_87] : memref<1x8x32xf32, #tpu.memory_space<vmem>>, vector<1x8x32xf32>
    %231 = vector.shape_cast %230 : vector<1x8x32xf32> to vector<8x32xf32>
    %232 = vector.shape_cast %226 : vector<8x32xf32> to vector<1x8x32xf32>
    tpu.vector_store %arg9[%c0_85, %c0_86, %c0_87], %232 {strides = array<i32>} : memref<1x8x32xf32, #tpu.memory_space<vmem>>, vector<1x8x32xf32>,
    return
  }
  func.func @transform_0(%arg0: i32, %arg1: i32) -> (i32, i32, i32, i32) {
    %c1_i32 = arith.constant 1 : i32
    %0 = arith.subi %c1_i32, %arg0 : i32
    %1 = arith.muli %0, %arg1 : i32
    %c1_i32_0 = arith.constant 1 : i32
    %2 = arith.subi %c1_i32_0, %arg1 : i32
    %3 = arith.muli %arg0, %2 : i32
    %4 = arith.addi %1, %3 : i32
    %c0_i32 = arith.constant 0 : i32
    %c0_i32_1 = arith.constant 0 : i32
    %c0_i32_2 = arith.constant 0 : i32
    %c0_i32_3 = arith.constant 0 : i32
    return %c0_i32, %4, %c0_i32_1, %c0_i32_2 : i32, i32, i32, i32
  }
  func.func @transform_1(%arg0: i32, %arg1: i32) -> (i32, i32, i32, i32) {
    %c0_i32 = arith.constant 0 : i32
    %c0_i32_0 = arith.constant 0 : i32
    %c0_i32_1 = arith.constant 0 : i32
    %c0_i32_2 = arith.constant 0 : i32
    return %arg0, %c0_i32, %c0_i32_0, %c0_i32_1 : i32, i32, i32, i32
  }
  func.func @transform_2(%arg0: i32, %arg1: i32) -> (i32, i32, i32) {
    %c0_i32 = arith.constant 0 : i32
    %c0_i32_0 = arith.constant 0 : i32
    %c0_i32_1 = arith.constant 0 : i32
    return %arg0, %c0_i32, %c0_i32_0 : i32, i32, i32
  }
  func.func @transform_3(%arg0: i32, %arg1: i32) -> (i32, i32, i32) {
    %c0_i32 = arith.constant 0 : i32
    %c0_i32_0 = arith.constant 0 : i32
    %c0_i32_1 = arith.constant 0 : i32
    return %arg0, %c0_i32, %c0_i32_0 : i32, i32, i32
  }
  func.func @transform_4(%arg0: i32, %arg1: i32) -> (i32, i32) {
    %c0_i32 = arith.constant 0 : i32
    %c0_i32_0 = arith.constant 0 : i32
    %c0_i32_1 = arith.constant 0 : i32
    return %c0_i32, %c0_i32_0 : i32, i32
  }
  func.func @transform_5(%arg0: i32, %arg1: i32) -> (i32, i32, i32, i32) {
    %c1_i32 = arith.constant 1 : i32
    %0 = arith.subi %c1_i32, %arg0 : i32
    %1 = arith.muli %0, %arg1 : i32
    %c1_i32_0 = arith.constant 1 : i32
    %2 = arith.subi %c1_i32_0, %arg1 : i32
    %3 = arith.muli %arg0, %2 : i32
    %4 = arith.addi %1, %3 : i32
    %c0_i32 = arith.constant 0 : i32
    %c0_i32_1 = arith.constant 0 : i32
    %c0_i32_2 = arith.constant 0 : i32
    return %arg0, %4, %c0_i32, %c0_i32_1 : i32, i32, i32, i32
  }
  func.func @transform_6(%arg0: i32, %arg1: i32) -> (i32, i32, i32) {
    %c0_i32 = arith.constant 0 : i32
    %c0_i32_0 = arith.constant 0 : i32
    %c0_i32_1 = arith.constant 0 : i32
    return %arg0, %c0_i32, %c0_i32_0 : i32, i32, i32
  }
  func.func @transform_7(%arg0: i32, %arg1: i32) -> (i32, i32, i32) {
    %c0_i32 = arith.constant 0 : i32
    %c0_i32_0 = arith.constant 0 : i32
    %c0_i32_1 = arith.constant 0 : i32
    return %arg0, %c0_i32, %c0_i32_0 : i32, i32, i32
  }
}

</mosaic_0001>

<bundles_post_ra>
// kernel: tpu_custom_call.1
= control target key start
LH: loop header
LB: loop body
LE: loop exit
PB: predicated region body
PF: predicated region fallthrough
CT: control target
= control target key end

     0   :  { %s2410_s0 = inlined_call_operand.hbm [shape: f32[1,8,8,128], index: 0, kind: input, shape index: {}]   ;;  %s2411_s1 = inlined_call_operand.hbm [shape: f32[2,1,128,128], index: 1, kind: input, shape index: {}]   ;;  %s2412_s2 = inlined_call_operand.hbm [shape: f32[2,32,128], index: 2, kind: input, shape index: {}]   ;;  %s2413_s3 = inlined_call_operand.vmem [shape: f32[2,1,128], index: 3, kind: input, shape index: {}]   ;;  %s2414_s4 = inlined_call_operand.hbm [shape: s32[8,32], index: 4, kind: input, shape index: {}]   ;;  %s2415_s5 = inlined_call_operand.hbm [shape: f32[2,8,8,32], index: 5, kind: output, shape index: {0}]   ;;  %s2416_s6 = inlined_call_operand.hbm [shape: f32[2,8,32], index: 6, kind: output, shape index: {1}]   ;;  %s2417_s7 = inlined_call_operand.hbm [shape: f32[2,8,32], index: 7, kind: output, shape index: {2}]  }
   0x1   :  { %2458 = sst [smem:[#allocation38_spill]] %s2410_s0 }
   0x2   :  { %2459 = sst [smem:[#allocation39_spill]] %s2411_s1 }
   0x3   :  { %2460 = sst [smem:[#allocation40_spill]] %s2412_s2 }
   0x4   :  { %2461 = sst [smem:[#allocation41_spill]] %s2413_s3 }
   0x5   :  { %2462 = sst [smem:[#allocation42_spill]] %s2414_s4 }
   0x6   :  { %2463 = sst [smem:[#allocation43_spill]] %s2415_s5 }
   0x7   :  { %2464 = sst [smem:[#allocation44_spill]] %s2416_s6 }
   0x8   :  { %2465 = sst [smem:[#allocation45_spill]] %s2417_s7 }
   0x9   :  { %13 = vsyncpa [#allocation4], 0 }
   0xa   :  { %15 = vsyncpa [#allocation4 + $0x1], 0 }
   0xb   :  { %16 = vsyncpa [#allocation7], 0 }
   0xc   :  { %18 = vsyncpa [#allocation7 + $0x1], 0 }
   0xd   :  { %19 = vsyncpa [#allocation10], 0 }
   0xe   :  { %20 = vsyncpa [#allocation5], 0 }
   0xf   :  { %22 = vsyncpa [#allocation5 + $0x1], 0 }
  0x10   :  { %23 = vsyncpa [#allocation13], 0 }
  0x11   :  { %25 = vsyncpa [#allocation13 + $0x1], 0  ;;  %s1844_s24 = smov 0   ;;  %s1846_s25 = smov 0  }
  0x12   :  { %s1848_s26 = smov 0   ;;  %s1850_s27 = smov 0  }
  0x13   :  { %s1852_s28 = smov 0   ;;  %s1854_s29 = smov 0  }
  0x14   :  { %s1856_s30 = smov 0   ;;  %s1858_s8 = smov 0  }
  0x15   :  { %s1860_s9 = smov 0   ;;  %s1862_s10 = smov 0  }
  0x16   :  { %s1864_s11 = smov 0   ;;  %s1866_s12 = smov 0  }
  0x17   :  { %s1868_s13 = smov 0   ;;  %s1870_s14 = smov 0  }
  0x18 LB: > { %2466 = sst [smem:[#allocation20_spill]] %s1741_s24  ;;  %p2421_p0 = scmp.eq.s32.totalorder %s1793_s14, 0  ;;  %s1793_s14 = sphi %s1870_s14, %s31_s14   ;;  %s1789_s13 = sphi %s1868_s13, %s2541_s13   ;;  %s1785_s12 = sphi %s1866_s12, %s2540_s12   ;;  %s1781_s11 = sphi %s1864_s11, %s2539_s11   ;;  %s1777_s10 = sphi %s1862_s10, %s2538_s10   ;;  %s1773_s9 = sphi %s1860_s9, %s2548_s9   ;;  %s1769_s8 = sphi %s1858_s8, %s2547_s8   ;;  %s1765_s30 = sphi %s1856_s30, %s2536_s30   ;;  %s1761_s29 = sphi %s1854_s29, %s2546_s29   ;;  %s1757_s28 = sphi %s1852_s28, %s2545_s28   ;;  %s1753_s27 = sphi %s1850_s27, %s2544_s27   ;;  %s1749_s26 = sphi %s1848_s26, %s2543_s26   ;;  %s1745_s25 = sphi %s1846_s25, %s2542_s25   ;;  %s1741_s24 = sphi %s1844_s24, %s2533_s24  }
  0x19   : > { %2467 = sst [smem:[#allocation21_spill]] %s1745_s25  ;;  %p93_p1 = scmp.ne.s32.totalorder %s1761_s29, %s1757_s28 }
  0x1a   : > { %2468 = sst [smem:[#allocation22_spill]] %s1757_s28  ;;  %p2420_p2 = scmp.lt.s32.totalorder %s1793_s14, 4 }
  0x1b   : > { %2469 = sst [smem:[#allocation23_spill]] %s1769_s8  ;;  %p95_p3 = por %p93_p1, %p2421_p0 }
  0x1c   : > { %2470 = sst [smem:[#allocation24_spill]] %s1777_s10  ;;  %s325_s16 = sand.u32 1, %s1793_s14  }
  0x1d   : > { %2471 = sst [smem:[#allocation25_spill]] %s1781_s11  ;;  %s327_s17 = sand.u32 1, %s1761_s29  }
  0x1e   : > { %2472 = sst [smem:[#allocation26_spill]] %s1785_s12  ;;  %s1218_s18 = sshll.u32 %s327_s17, 7 }
  0x1f   : > { %2473 = sst [smem:[#allocation27_spill]] %s1789_s13  ;;  %s1259_s19 = sshll.u32 %s1789_s13, 7 }
  0x20   : > { %s2474_s1 = sld [smem:[#allocation39_spill]]  ;;  %s329_s23 = scalar_lea.vmem [#allocation6], %s1218_s18 }
  0x21   : > { %s337_s7 = sshll.u32 %s329_s23, 4  ;;  %p1932_p4 = pnand %p2420_p2, %p95_p3  ;;  %s338_s7 = int_to_ptr.vmem [resolvable:$true] %s337_s7 }
  0x22   : > { %s1221_s20 = sshll.u32 %s327_s17, 5  ;;  %s2423_s18 = smov 128  }
  0x23   : > { %s2426_s21 = smov 8   ;;  %s1947_s17 = sadd.s32 4294967295, %s1793_s14  }
  0x24   : > { %2476 = sst [smem:[#allocation28_spill]] %s1947_s17  ;;  %p73_p5 = scmp.ne.s32.totalorder %s1769_s8, %s1765_s30 }
  0x25   : > { %p2422_p6 = scmp.eq.s32.totalorder %s1947_s17, 0  ;;  %p99_p7 = scmp.ne.s32.totalorder %s1757_s28, %s1753_s27 }
  0x26   : > { %s334_s22 = scalar_lea.hbm %s2474_s1, %s1259_s19  ;;  %s1936_s19 = scalar_lea.sflag [#allocation7], %s325_s16 }
  0x27   : > { %s335_s15 = sshll.u32 %s334_s22, 4  ;;  %s351_s22 = scalar_lea.vmem [#allocation8], %s1221_s20  ;;  %s336_s15 = int_to_ptr.hbm [resolvable:$true] %s335_s15 }
  0x28   : > { %1287 = dma.hbm_to_vmem [thread:$0]  (!%p1932_p4), %s336_s15, 2048, %s338_s7, %s1936_s19, %s2423_s18, %s2423_s18, %s2426_s21  }
  0x29   : > { %s1944_s23 = sshll.u32 %s351_s22, 4  ;;  %s2425_s16 = sadd.s32 4294967294, %s1793_s14   ;;  %s360_s23 = int_to_ptr.vmem [resolvable:$true] %s1944_s23 }
  0x2a   : > { %p207_p8 = scmp.ne.s32.totalorder %s1749_s26, %s1745_s25  ;;  %p1959_p9 = por %p2422_p6, %p73_p5 }
  0x2b   : > { %p208_p10 = scmp.eq.s32.totalorder %s1947_s17, 3  ;;  %p1966_p11 = por %p99_p7, %p2422_p6 }
  0x2c   : > { %s2477_s1 = scalar_select %p1959_p9, 1, 0 }
  0x2d   : > { %s2479_s7 = scalar_select %p1966_p11, 1, 0 }
  0x2e   : > { %2478 = sst [smem:[#allocation29_spill]] %s2477_s1  ;;  %p213_p12 = scmp.ne.s32.totalorder %s1745_s25, %s1741_s24 }
  0x2f   : > { %2480 = sst [smem:[#allocation30_spill]] %s2479_s7  ;;  %p1972_p13 = por %p208_p10, %p207_p8 }
  0x30   : > { %p214_p3 = scmp.eq.s32.totalorder %s2425_s16, 3  ;;  %p1981_p5 = por %p208_p10, %p93_p1 }
  0x31   : > { %s2481_s15 = scalar_select %p1972_p13, 1, 0 }
  0x32   : > { %s2483_s27 = scalar_select %p1981_p5, 1, 0 }
  0x33   : > { %2482 = sst [smem:[#allocation31_spill]] %s2481_s15  ;;  %p1212_p2 = scmp.ge.s32.totalorder %s1793_s14, 1 }
  0x34   : > { %2484 = sst [smem:[#allocation32_spill]] %s2483_s27  ;;  %p1986_p0 = por %p214_p3, %p213_p12 }
  0x35   : > { %p1990_p6 = por %p214_p3, %p99_p7  ;;  %p273_p8 = scmp.lt.s32.totalorder %s1793_s14, 5 }
  0x36   : > { %s2485_s30 = scalar_select %p1986_p0, 1, 0 }
  0x37   : > { %s2487_s20 = scalar_select %p1990_p6, 1, 0 }
  0x38   : > { %2486 = sst [smem:[#allocation33_spill]] %s2485_s30  ;;  %p1998_p1 = pnand %p1212_p2, %p273_p8 }
  0x39   : > { %2488 = sst [smem:[#allocation34_spill]] %s2487_s20  ;;  %s1797_s30 = smov [#allocation9]  }
  0x3a   : > { %s2489_s4 = sld [smem:[#allocation42_spill]]  ;;  %s287_s24 = sshll.u32 %s1797_s30, 4  ;;  %s288_s24 = int_to_ptr.vmem [resolvable:$true] %s287_s24 }
  0x3b   : > { %p1277_p7 = pneg %p1998_p1  ;;  %p2491_p10 = scmp.eq.s32.totalorder %s1947_s17, 0 }
  0x3c   : > { %s40_s20 = sadd.s32 1, %s1785_s12  ;;  %s43_s18 = sadd.s32 1, %s1789_s13 }
  0x3d   : > { %p1278_p12 = pnand %p1277_p7, %p2491_p10  ;;  %p41_p3 = scmp.ge.s32.totalorder %s40_s20, 2 }
  0x3e   : > { %s47_s30 = ssub.s32 1, %s1789_s13  ;;  %s49_s22 = ssub.s32 1, %s1785_s12 }
  0x3f   : > { %s2550_s20 = smov (%p41_p3, %s40_s20), 0  ;;  %s2552_s18 = smov (!%p41_p3, %s43_s18), %s1789_s13 }
  0x40   : > { %s285_s16 = sshll.u32 %s2489_s4, 4  ;;  %2492 = sst [smem:[#allocation35_spill]] %s2550_s20  ;;  %s286_s16 = int_to_ptr.hbm [resolvable:$true] %s285_s16 }
  0x41   : > { %1280 = dma.hbm_to_vmem [thread:$0]  (!%p1278_p12), %s286_s16, 128, %s288_s24, [#allocation10]  }
  0x42   : > { %p45_p2 = scmp.ge.s32.totalorder %s2552_s18, 2  ;;  %s48_s4 = smul.u32 %s1785_s12, %s47_s30 }
  0x43   : > { %s50_s15 = smul.u32 %s1789_s13, %s49_s22  ;;  %s54_s27 = ssub.s32 1, %s2550_s20 }
  0x44   : > { %s2554_s18 = smov (%p45_p2, %s2552_s18), 0  ;;  %s60_s16 = sadd.s32 1, %s1773_s9 }
  0x45   : > { %2493 = sst [smem:[#allocation36_spill]] %s2554_s18  ;;  %s51_s24 = sadd.s32 %s50_s15, %s48_s4 }
  0x46   : > { %s52_s5 = ssub.s32 1, %s2554_s18  ;;  %s55_s10 = smul.u32 %s54_s27, %s2554_s18 }
  0x47   : > { %s53_s3 = smul.u32 %s52_s5, %s2550_s20  ;;  %p67_p8 = scmp.ne.s32.totalorder %s1773_s9, %s1769_s8 }
  0x48   : > { %s83_s11 = ssub.s32 %s1789_s13, %s2554_s18  ;;  %s197_s30 = sadd.s32 1, %s1749_s26 }
  0x49   : > { %s56_s22 = sadd.s32 %s55_s10, %s53_s3  ;;  %p2494_p7 = scmp.eq.s32.totalorder %s1793_s14, 0 }
  0x4a   : > { %s57_s25 = ssub.s32 %s51_s24, %s56_s22  ;;  %p84_p12 = scmp.eq.s32.totalorder %s83_s11, 0 }
  0x4b   : > { %p2029_p10 = por %p2494_p7, %p67_p8  ;;  %p58_p3 = scmp.eq.s32.totalorder %s57_s25, 0 }
  0x4c   : > { %s194_s4 = sor.u32 %s83_s11, %s57_s25  ;;  %s2496_s15 = sadd.s32 1, %s1761_s29 }
  0x4d   : > { %s2036_s27 = scalar_select %p84_p12, %s1761_s29, %s2496_s15  }
  0x4e   : > { %s2039_s5 = scalar_select %p58_p3, %s1773_s9, %s60_s16  }
  0x4f   : > { %p195_p2 = scmp.eq.s32.totalorder %s194_s4, 0  ;;  %s298_s3 = sand.u32 1, %s1773_s9  }
  0x50   : > { %2497 = sst [smem:[#allocation37_spill]] %s2039_s5  ;;  %s1215_s10 = sshll.u32 %s298_s3, 5 }
  0x51   : > { %s2043_s18 = scalar_select %p195_p2, %s1749_s26, %s197_s30  }
  0x52   : > { %s1258_s20 = sshll.u32 %s51_s24, 5  ;;  %s2498_s0 = sld [smem:[#allocation38_spill]] }
  0x53   : > { %s302_s17 = scalar_lea.vmem [#allocation3], %s1215_s10  ;;  %p2499_p8 = scmp.lt.s32.totalorder %s1793_s14, 4 }
  0x54   : > { %s315_s1 = sshll.u32 %s302_s17, 4  ;;  %s1260_s11 = sshll.u32 %s1789_s13, 5  ;;  %s316_s1 = int_to_ptr.vmem [resolvable:$true] %s315_s1 }
  0x55   : > { %p2052_p7 = pnand %p2499_p8, %p2029_p10  ;;  %s2501_s2 = sld [smem:[#allocation40_spill]] }
  0x56   : > { %s299_s7 = scalar_lea.sflag [#allocation4], %s298_s3 }
  0x57   : > { %p1523_p3 = pneg %p2052_p7 }
  0x58   : > { %s312_s28 = scalar_lea.hbm %s2498_s0, %s1258_s20  ;;  %s1526_s4 = scalar_lea.hbm %s2498_s0, 64 }
  0x59   : > { %s313_s8 = sshll.u32 %s312_s28, 4  ;;  %s314_s8 = int_to_ptr.hbm [resolvable:$true] %s313_s8 }
  0x5a   : > { %s1519_s20 = sshra.s32 %s314_s8, 4  ;;  %s1520_s20 = int_to_ptr.hbm [resolvable:$true] %s1519_s20 }
  0x5b   : > { %s356_s30 = scalar_lea.hbm %s2501_s2, %s1260_s11  ;;  %s1521_s17 = scalar_lea.hbm %s1520_s20, 32 }
  0x5c   : > { %p1522_p12 = scmp.ne.s32.totalorder %s1520_s20, %s1521_s17  ;;  %p1528_p10 = scmp.lt.s32.totalorder %s1526_s4, %s1521_s17 }
  0x5e   : > { %p1524_p2 = pnand %p1523_p3, %p1522_p12 }
  0x60   : > { %p1525_p6 = pneg %p1524_p2 }
  0x62   : > { %p1530_p8 = pnand %p1528_p10, %p1525_p6 }
  0x64   : > { %1533 = shalt.err (!%p1530_p8)
}
  0x65   : > { %s2502_s15 = smov 8   ;;  %s2503_s10 = smov 128  }
  0x66   : > { %1284 = dma.hbm_to_vmem [thread:$0]  (!%p2052_p7), %s314_s8, 512, %s316_s1, %s299_s7, %s2503_s10, %s2503_s10, %s2502_s15  }
  0x67   : > { %s357_s3 = sshll.u32 %s356_s30, 4  ;;  %377 = sbr.rel (%p1998_p1) target bundleno = 2706 (0xa92), region = 40  ;;  %s358_s3 = int_to_ptr.hbm [resolvable:$true] %s357_s3 }
  0x68   : > { %1290 = dma.hbm_to_vmem [thread:$0]  (!%p1932_p4), %s358_s3, 512, %s360_s23, %s1936_s19, %s2503_s10, %s2503_s10, %s2502_s15  }
  0x69   : > { %s2504_s22 = sld [smem:[#allocation23_spill]] (!%p1998_p1) }
  0x6f   : > { %s379_s16 = sand.u32 1, %s2504_s22  }
  0x70   : > { %s1225_s25 = sshll.u32 %s379_s16, 5  ;;  %s380_s24 = scalar_lea.sflag [#allocation4], %s379_s16 }
  0x71   : > { %s2080_s20 = scalar_lea.vmem [#allocation3], %s1225_s25 }
  0x72   : > { %1720 = dma.done.wait (%p1959_p9), %s380_s24, 512  }
  0x73   : > { %1722 = vsyncadd (%p1959_p9), %s380_s24, 4294966784  ;;  %s2506_s1 = sld [smem:[#allocation28_spill]] }
  0x74   : > { %s2507_s6 = sld [smem:[#allocation22_spill]] }
  0x79   : > { %s2454_s19 = sand.u32 1, %s2506_s1  }
  0x7a   : > { %s2088_s23 = sand.u32 1, %s2507_s6   ;;  %s390_s30 = scalar_lea.sflag [#allocation7], %s2454_s19 }
  0x7b   : > { %s1226_s21 = sshll.u32 %s2088_s23, 7 }
  0x7c   : > { %s2093_s7 = scalar_lea.vmem [#allocation6], %s1226_s21 }
  0x7d   : > { %1724 = dma.done.wait (%p1966_p11), %s390_s30, 2560  }
  0x7e   : > { %1726 = vsyncadd (%p1966_p11), %s390_s30, 4294964736  ;;  %s1227_s17 = sshll.u32 %s2088_s23, 5  ;;  %p2509_p4 = scmp.eq.s32.totalorder %s2506_s1, 0 }
  0x7f   : > { %s2100_s28 = scalar_lea.vmem [#allocation8], %s1227_s17 }
  0x80   : > { %1728 = dma.done.wait (%p2509_p4), [#allocation10], 128   ;;  %p2510_p6 = pmov %p2509_p4 }
  0x81   : > { %s2511_s12 = sld [smem:[#allocation21_spill]]  ;;  %s1230_s10 = sshll.u32 %s2088_s23, 3  ;;  %v498_v0 = vld [vmem:[%s2093_s7 + $0x78] sm:$0xff]  ;;  %v497_v1 = vld [vmem:[%s2093_s7 + $0x70] sm:$0xff]  ;;  %v496_v2 = vld [vmem:[%s2093_s7 + $0x68] sm:$0xff] }
  0x82   : > { %1730 = vsyncadd (%p2510_p6), [#allocation10], 4294967168  ;;  %s2512_s4 = sld [smem:[#allocation25_spill]]  ;;  %499 = vmatpush.msra.mxu0 %v498_v0  ;;  %v495_v3 = vld [vmem:[%s2093_s7 + $0x60] sm:$0xff]  ;;  %v494_v4 = vld [vmem:[%s2093_s7 + $0x58] sm:$0xff]  ;;  %s2150_s6 = scalar_lea.vmem [#allocation12], %s1230_s10 }
  0x83   : > { %s2513_s16 = sld [smem:[#allocation41_spill]]  ;;  %v493_v5 = vld [vmem:[%s2093_s7 + $0x50] sm:$0xff]  ;;  %v492_v6 = vld [vmem:[%s2093_s7 + $0x48] sm:$0xff]  ;;  %v491_v7 = vld [vmem:[%s2093_s7 + $0x40] sm:$0xff]  ;;  %s2154_s8 = scalar_lea.vmem [#allocation14], %s1230_s10 }
  0x84   : > { %500 = vmatpush.msra.mxu0 %v497_v1  ;;  %v490_v8 = vld [vmem:[%s2093_s7 + $0x38] sm:$0xff]  ;;  %v489_v9 = vld [vmem:[%s2093_s7 + $0x30] sm:$0xff]  ;;  %v488_v10 = vld [vmem:[%s2093_s7 + $0x28] sm:$0xff]  ;;  %s2514_s21 = sld [smem:[#allocation24_spill]] }
  0x85   : > { %v487_v11 = vld [vmem:[%s2093_s7 + $0x20] sm:$0xff]  ;;  %v486_v12 = vld [vmem:[%s2093_s7 + $0x18] sm:$0xff]  ;;  %v485_v13 = vld [vmem:[%s2093_s7 + $0x10] sm:$0xff] }
  0x86   : > { %501 = vmatpush.msra.mxu0 %v496_v2  ;;  %v484_v14 = vld [vmem:[%s2093_s7 + $0x8] sm:$0xff]  ;;  %v483_v15 = vld [vmem:[%s2093_s7] sm:$0xff]  ;;  %v481_v18 = vld [vmem:[%s2080_s20 + $0x10] sm:$0xff] }
  0x87   : > { %s2453_s15 = sand.u32 1, %s2511_s12   ;;  %v479_v16 = vld [vmem:[%s2080_s20] sm:$0xff]  ;;  %v480_v17 = vld [vmem:[%s2080_s20 + $0x8] sm:$0xff]  ;;  %v482_v19 = vld [vmem:[%s2080_s20 + $0x18] sm:$0xff] }
  0x88   : > { %s2110_s3 = sshll.u32 %s2453_s15, 5  ;;  %p469_p9 = scmp.lt.s32.totalorder %s2512_s4, 1  ;;  %502 = vmatpush.msra.mxu0 %v495_v3 }
  0x89   : > { %s2146_s20 = scalar_lea.vmem [#allocation11], %s2110_s3 }
  0x8a   : > { %s2556_s4 = smov (!%p469_p9, %s2512_s4), 1  ;;  %503 = vmatpush.msra.mxu0 %v494_v4  ;;  %p1232_p11 = scmp.ne.s32.totalorder %s2514_s21, 0 }
  0x8b   : > { %s471_s25 = scalar_lea.vmem %s2513_s16, %s2556_s4 }
  0x8c   : > { %504 = vmatpush.msra.mxu0 %v493_v5  ;;  %v1426_v20 = vld [vmem:[%s471_s25] ss:$0 sm:$0xff] }
  0x8e   : > { %505 = vmatpush.msra.mxu0 %v492_v6 }
  0x90   : > { %506 = vmatpush.msra.mxu0 %v491_v7 }
  0x92   : > { %507 = vmatpush.msra.mxu0 %v490_v8 }
  0x94   : > { %508 = vmatpush.msra.mxu0 %v489_v9 }
  0x96   : > { %509 = vmatpush.msra.mxu0 %v488_v10 }
  0x98   : > { %510 = vmatpush.msra.mxu0 %v487_v11 }
  0x9a   : > { %511 = vmatpush.msra.mxu0 %v486_v12 }
  0x9c   : > { %512 = vmatpush.msra.mxu0 %v485_v13 }
  0x9e   : > { %513 = vmatpush.msra.mxu0 %v484_v14 }
  0xa0   : > { %514 = vmatpush.msra.mxu0 %v483_v15 }
  0xa1   : > { %515 = vmatmul.f32.vlgmr.msra.gmra.mxu0 %v479_v16 }
  0xa9   : > { %518 = vmatmul.f32.gmra.mxu0 %v480_v17 }
  0xb1   : > { %521 = vmatmul.f32.gmra.mxu0 %v481_v18 }
  0xb9   : > { %524 = vmatmul.f32.gmra.mxu0 %v482_v19 }
 0x11e   : > { %v516_v21 = vpop.f32.mrf.mxu0 }
 0x11f   : > { %v531_v22 = vadd.f32 %v1426_v20, %v516_v21 }
 0x121   : > { %535 = vst [vmem:[#allocation2] sm:$0xff] %v531_v22 }
 0x126   : > { %v519_v23 = vpop.f32.mrf.mxu0 }
 0x127   : > { %v532_v24 = vadd.f32 %v1426_v20, %v519_v23 }
 0x129   : > { %536 = vst [vmem:[#allocation2 + $0x8] sm:$0xff] %v532_v24 }
 0x12e   : > { %v522_v25 = vpop.f32.mrf.mxu0 }
 0x12f   : > { %v533_v26 = vadd.f32 %v1426_v20, %v522_v25 }
 0x131   : > { %537 = vst [vmem:[#allocation2 + $0x10] sm:$0xff] %v533_v26 }
 0x135   : > { %542 = sbr.rel (%p1232_p11) target bundleno = 317 (0x13d), region = 60 }
 0x136   : > { %v525_v27 = vpop.f32.mrf.mxu0 }
 0x137   : > { %v534_v28 = vadd.f32 %v1426_v20, %v525_v27 }
 0x139   : > { %538 = vst [vmem:[#allocation2 + $0x18] sm:$0xff] %v534_v28 }
 0x13a   : > { %vm543_vm0 = vcmask 261120   ;;  %v1798_v29 = vmov 0.0  }
 0x13b   : > { %544 = vst.msk [vmem:[%s2150_s6] sm:$0xff] %vm543_vm0, %v1798_v29 }
 0x13c   : > { %545 = vst.msk [vmem:[%s2154_s8] sm:$0xff] %vm543_vm0, %v1798_v29 }
 0x13d PF: > { %v550_v30 = vld [vmem:[%s2100_s28 + $0x18] sm:$0xff]  ;;  %v549_v31 = vld [vmem:[%s2100_s28 + $0x10] sm:$0xff]  ;;  %v548_v32 = vld [vmem:[%s2100_s28 + $0x8] sm:$0xff]  ;;  %s2515_s23 = sld [smem:[#allocation25_spill]]  ;;  %vm563_vm1 = vcmask 261120   ;;  %s1799_s17 = smov 64  }
 0x13e   : > { %579 = vmatpush.msra.mxu1 %v550_v30  ;;  %668 = vmatpush.msra.mxu2 %v550_v30  ;;  %v547_v33 = vld [vmem:[%s2100_s28] sm:$0xff]  ;;  %s1800_s28 = smov 32   ;;  %s2516_s12 = sld [smem:[#allocation24_spill]] }
 0x13f   : > { %757 = vmatpush.msra.mxu3 %v550_v30  ;;  %s1801_s4 = smov 96   ;;  %v2188_v63 = vld [vmem:[#allocation9] sm:$0xff]  ;;  %s2517_s15 = sld [smem:[#allocation43_spill]] }
 0x140   : > { %580 = vmatpush.msra.mxu1 %v549_v31  ;;  %669 = vmatpush.msra.mxu2 %v549_v31  ;;  %s2518_s2 = sld [smem:[#allocation44_spill]] }
 0x141   : > { %758 = vmatpush.msra.mxu3 %v549_v31 }
 0x142   : > { %581 = vmatpush.msra.mxu1 %v548_v32  ;;  %v2164_v34 = vld [vmem:[%s2150_s6] sm:$0xff]  ;;  %670 = vmatpush.msra.mxu2 %v548_v32 }
 0x143   : > { %759 = vmatpush.msra.mxu3 %v548_v32  ;;  %s1234_s30 = smul.u32 24, %s2515_s23  ;;  %v553_v39 = vld [vmem:[%s2154_s8] sm:$0xff]  ;;  %s2182_s3 = ssub.s32 1, %s2515_s23 }
 0x144   : > { %582 = vmatpush.msra.mxu1 %v547_v33  ;;  %671 = vmatpush.msra.mxu2 %v547_v33  ;;  %s2179_s10 = sshll.u32 %s2516_s12, 2  ;;  %s1237_s21 = sshll.u32 %s2515_s23, 1 }
 0x145   : > { %1235 = vmatmul.msk.f32.vlgmr.msra.gmra.mxu1 %vm563_vm1, %v2164_v34  ;;  %760 = vmatpush.msra.mxu3 %v547_v33  ;;  %s561_s7 = scalar_lea.vmem [#allocation2], %s1234_s30  ;;  %s557_s22 = ssub.s32 7, %s2179_s10 }
 0x146   : > { %845 = vmatpush.msrb.mxu1 %v550_v30  ;;  %v562_v35 = vld [vmem:[%s561_s7] sm:$0xff]  ;;  %s556_s11 = smul.u32 %s2179_s10, %s2182_s3  ;;  %s635_s1 = scalar_lea.vmem %s2146_s20, %s1234_s30 [#allocation11] }
 0x147   : > { %s558_s25 = smul.u32 %s2515_s23, %s557_s22  ;;  %s2203_s7 = sadd.s32 %s1237_s21, %s2182_s3 }
 0x148   : > { %846 = vmatpush.msrb.mxu1 %v549_v31  ;;  %s1238_s30 = sshll.u32 %s2203_s7, 3  ;;  %s734_s7 = sadd.s32 2, %s2179_s10 }
 0x149   : > { %s559_s24 = sadd.s32 %s558_s25, %s556_s11  ;;  %s651_s22 = scalar_lea.vmem [#allocation2], %s1238_s30 }
 0x14a   : > { %847 = vmatpush.msrb.mxu1 %v548_v32  ;;  %v628_v62 = vstv %s559_s24  ;;  %v652_v5 = vld [vmem:[%s651_s22] sm:$0xff]  ;;  %s645_s11 = sadd.s32 1, %s2179_s10  ;;  %s647_s25 = ssub.s32 6, %s2179_s10 }
 0x14b   : > { %vm629_vm6 = vcmp.lt.s32.totalorder %v628_v62, %v2188_v63  ;;  %s646_s24 = smul.u32 %s645_s11, %s2182_s3  ;;  %s724_s22 = scalar_lea.vmem %s2146_s20, %s1238_s30 [#allocation11] }
 0x14c   : > { %848 = vmatpush.msrb.mxu1 %v547_v33  ;;  %s1241_s11 = sshll.u32 %s2182_s3, 1  ;;  %s736_s30 = ssub.s32 5, %s2179_s10 }
 0x1c2   : > { %v584_v36 = vpop.f32.mrf.mxu1 }
 0x1c3   : > { %v585_v37 = vadd.f32 %v584_v36, %v562_v35 }
 0x1c5   : > { %1427 = vtanh.f32 %v585_v37  ;;  %v1236_v40 = vmul.f32 -1.442695, %v585_v37 }
 0x1c7   : > { %1429 = vpow2.f32 %v1236_v40 }
 0x1cb   : > { %v1428_v38 = vpop.eup %1427 }
 0x1cc   : > { %613 = vrot.lane.b32.xlu0 %v1428_v38, %s1799_s17 }
 0x1cd   : > { %v1430_v41 = vpop.eup %1429 }
 0x1ce   : > { %v590_v42 = vadd.f32 1.0, %v1430_v41 }
 0x1d0   : > { %1431 = vrcp.f32 %v590_v42  ;;  %v602_v48 = vand.u32 2147483648, %v590_v42  ;;  %vm596_vm3 = vweird.f32 %v590_v42  ;;  %v600_v49 = vand.u32 2147483647, %v590_v42 }
 0x1d2   : > { %v603_v51 = vor.u32 1.1754944e-38, %v602_v48  ;;  %vm601_vm5 = vcmp.eq.f32.partialorder %v600_v49, 8.507059e+37 }
 0x1d4   : > { %608 = vrot.lane.b32.xlu0 %v553_v39, %s1800_s28 }
 0x1d6   : > { %v1432_v43 = vpop.eup %1431 }
 0x1d7   : > { %v592_v44 = vmul.f32 %v1432_v43, %v590_v42  ;;  %vm597_vm2 = vweird.f32 %v1432_v43 }
 0x1d8   : > { %vm598_vm4 = vmor %vm596_vm3, %vm597_vm2 }
 0x1d9   : > { %v593_v45 = vsub.f32 1.0, %v592_v44 }
 0x1db   : > { %v594_v46 = vmul.f32 %v1432_v43, %v593_v45 }
 0x1dd   : > { %v595_v47 = vadd.f32 %v1432_v43, %v594_v46 }
 0x1df   : > { %v599_v50 = vsel %vm598_vm4, %v1432_v43, %v595_v47 }
 0x1e0   : > { %v604_v53 = vsel %vm601_vm5, %v603_v51, %v599_v50 }
 0x23e   : > { %v614_v52 = vpop.permute.xlu0 %613 }
 0x23f   : > { %v616_v54 = vmul.f32 %v614_v52, %v604_v53 }
 0x241   : > { %618 = vrot.lane.b32.xlu1 %v616_v54, %s1800_s28 }
 0x246   : > { %v609_v55 = vpop.permute.xlu0 %608 }
 0x247   : > { %v611_v56 = vmul.f32 %v609_v55, %v604_v53 }
 0x2b3   : > { %v619_v57 = vpop.permute.xlu1 %618 }
 0x2b4   : > { %v621_v58 = vadd.f32 %v619_v57, %v611_v56 }
 0x2b6   : > { %1433 = vtanh.f32 %v621_v58 }
 0x2bc   : > { %v1434_v59 = vpop.eup %1433 }
 0x2bd   : > { %624 = vrot.lane.b32.xlu1 %v1434_v59, %s1799_s17 }
 0x32f   : > { %v625_v60 = vpop.permute.xlu1 %624 }
 0x330   : > { %v627_v61 = vmul.f32 %v625_v60, %v604_v53 }
 0x332   : > { %631 = vrot.lane.b32.xlu2 %v627_v61, %s1800_s28 }
 0x33a   : > { %639 = vrot.lane.b32.xlu2 %v621_v58, %s1801_s4 }
 0x38c   : > { %v632_v0 = vpop.permute.xlu2 %631 }
 0x38d   : > { %v634_v1 = vsel %vm629_vm6, %v632_v0, 0.0  ;;  %v2195_v2 = vsel %vm629_vm6, %v632_v0, %v2164_v34 }
 0x38e   : > { %636 = vst.msk [vmem:[%s635_s1] sm:$0xff] %vm563_vm1, %v634_v1  ;;  %1239 = vmatmul.msk.f32.vlgmr.msra.gmra.mxu2 %vm563_vm1, %v2195_v2  ;;  %s648_s1 = smul.u32 %s2515_s23, %s647_s25  ;;  %s2227_s25 = sadd.s32 %s2515_s23, %s1241_s11 }
 0x390   : > { %s649_s21 = sadd.s32 %s648_s1, %s646_s24  ;;  %s1242_s24 = sshll.u32 %s2227_s25, 3 }
 0x391   : > { %v717_v31 = vstv %s649_s21  ;;  %s740_s1 = scalar_lea.vmem [#allocation2], %s1242_s24  ;;  %s735_s21 = smul.u32 %s734_s7, %s2182_s3 }
 0x392   : > { %vm718_vm11 = vcmp.lt.s32.totalorder %v717_v31, %v2188_v63  ;;  %v741_v37 = vld [vmem:[%s740_s1] sm:$0xff]  ;;  %s813_s1 = scalar_lea.vmem %s2146_s20, %s1242_s24 [#allocation11]  ;;  %s2455_s7 = smul.u32 24, %s2182_s3 }
 0x393   : > { %s822_s25 = sadd.s32 3, %s2179_s10  ;;  %s824_s24 = ssub.s32 4, %s2179_s10 }
 0x394   : > { %v640_v3 = vpop.permute.xlu2 %639 }
 0x395   : > { %v642_v4 = vsel %vm629_vm6, %v640_v3, %v553_v39 }
 0x396   : > { %697 = vrot.lane.b32.xlu1 %v642_v4, %s1800_s28 }
 0x408   : > { %v698_v24 = vpop.permute.xlu1 %697 }
 0x411   : > { %v673_v6 = vpop.f32.mrf.mxu2 }
 0x412   : > { %v674_v7 = vadd.f32 %v673_v6, %v652_v5 }
 0x414   : > { %1435 = vtanh.f32 %v674_v7  ;;  %v1240_v9 = vmul.f32 -1.442695, %v674_v7 }
 0x416   : > { %1437 = vpow2.f32 %v1240_v9 }
 0x41a   : > { %v1436_v8 = vpop.eup %1435 }
 0x41b   : > { %702 = vrot.lane.b32.xlu0 %v1436_v8, %s1799_s17 }
 0x41c   : > { %v1438_v10 = vpop.eup %1437 }
 0x41d   : > { %v679_v11 = vadd.f32 1.0, %v1438_v10 }
 0x41f   : > { %1439 = vrcp.f32 %v679_v11  ;;  %v691_v17 = vand.u32 2147483648, %v679_v11  ;;  %vm685_vm8 = vweird.f32 %v679_v11  ;;  %v689_v18 = vand.u32 2147483647, %v679_v11 }
 0x421   : > { %v692_v20 = vor.u32 1.1754944e-38, %v691_v17  ;;  %vm690_vm10 = vcmp.eq.f32.partialorder %v689_v18, 8.507059e+37 }
 0x425   : > { %v1440_v12 = vpop.eup %1439 }
 0x426   : > { %v681_v13 = vmul.f32 %v1440_v12, %v679_v11  ;;  %vm686_vm7 = vweird.f32 %v1440_v12 }
 0x427   : > { %vm687_vm9 = vmor %vm685_vm8, %vm686_vm7 }
 0x428   : > { %v682_v14 = vsub.f32 1.0, %v681_v13 }
 0x42a   : > { %v683_v15 = vmul.f32 %v1440_v12, %v682_v14 }
 0x42c   : > { %v684_v16 = vadd.f32 %v1440_v12, %v683_v15 }
 0x42e   : > { %v688_v19 = vsel %vm687_vm9, %v1440_v12, %v684_v16 }
 0x42f   : > { %v693_v22 = vsel %vm690_vm10, %v692_v20, %v688_v19 }
 0x430   : > { %v700_v25 = vmul.f32 %v698_v24, %v693_v22 }
 0x48d   : > { %v703_v21 = vpop.permute.xlu0 %702 }
 0x48e   : > { %v705_v23 = vmul.f32 %v703_v21, %v693_v22 }
 0x490   : > { %707 = vrot.lane.b32.xlu2 %v705_v23, %s1800_s28 }
 0x4ea   : > { %v708_v26 = vpop.permute.xlu2 %707 }
 0x4eb   : > { %v710_v27 = vadd.f32 %v708_v26, %v700_v25 }
 0x4ed   : > { %1441 = vtanh.f32 %v710_v27  ;;  %728 = vrot.lane.b32.xlu2 %v710_v27, %s1801_s4 }
 0x4f3   : > { %v1442_v28 = vpop.eup %1441 }
 0x4f4   : > { %713 = vrot.lane.b32.xlu0 %v1442_v28, %s1799_s17 }
 0x547   : > { %v729_v32 = vpop.permute.xlu2 %728 }
 0x548   : > { %v731_v33 = vsel %vm718_vm11, %v729_v32, %v642_v4 }
 0x566   : > { %v714_v29 = vpop.permute.xlu0 %713 }
 0x567   : > { %v716_v30 = vmul.f32 %v714_v29, %v693_v22 }
 0x569   : > { %720 = vrot.lane.b32.xlu1 %v716_v30, %s1800_s28 }
 0x571   : > { %786 = vrot.lane.b32.xlu1 %v731_v33, %s1800_s28 }
 0x5db   : > { %v721_v34 = vpop.permute.xlu1 %720 }
 0x5dc   : > { %v723_v35 = vsel %vm718_vm11, %v721_v34, 0.0  ;;  %v726_v36 = vsel %vm718_vm11, %v721_v34, %v2195_v2 }
 0x5dd   : > { %725 = vst.msk [vmem:[%s724_s22] sm:$0xff] %vm563_vm1, %v723_v35  ;;  %1243 = vmatmul.msk.f32.vlgmr.msra.gmra.mxu3 %vm563_vm1, %v726_v36  ;;  %s737_s22 = smul.u32 %s2515_s23, %s736_s30  ;;  %s828_s30 = scalar_lea.vmem [#allocation2], %s2455_s7 }
 0x5de   : > { %v829_v6 = vld [vmem:[%s828_s30] sm:$0xff] }
 0x5df   : > { %s738_s11 = sadd.s32 %s737_s22, %s735_s21  ;;  %s823_s21 = smul.u32 %s822_s25, %s2182_s3 }
 0x5e0   : > { %v806_v0 = vstv %s738_s11  ;;  %s825_s22 = smul.u32 %s2515_s23, %s824_s24  ;;  %s1252_s25 = sshll.u32 %s2515_s23, 3 }
 0x5e1   : > { %vm807_vm0 = vcmp.lt.s32.totalorder %v806_v0, %v2188_v63  ;;  %s956_s16 = scalar_lea.hbm %s2518_s2, %s1252_s25 }
 0x5e2   : > { %s826_s11 = sadd.s32 %s825_s22, %s823_s21  ;;  %s2283_s5 = sshll.u32 %s956_s16, 4  ;;  %s961_s5 = int_to_ptr.hbm [resolvable:$true] %s2283_s5 }
 0x5e3   : > { %v787_v56 = vpop.permute.xlu1 %786  ;;  %v894_v30 = vstv %s826_s11  ;;  %s1599_s22 = scalar_lea.hbm %s2518_s2, 16 }
 0x5e4   : > { %vm895_vm6 = vcmp.lt.s32.totalorder %v894_v30, %v2188_v63 }
 0x660   : > { %v762_v38 = vpop.f32.mrf.mxu3 }
 0x661   : > { %v763_v39 = vadd.f32 %v762_v38, %v741_v37 }
 0x663   : > { %1443 = vtanh.f32 %v763_v39  ;;  %v1244_v41 = vmul.f32 -1.442695, %v763_v39 }
 0x665   : > { %1445 = vpow2.f32 %v1244_v41 }
 0x669   : > { %v1444_v40 = vpop.eup %1443 }
 0x66a   : > { %791 = vrot.lane.b32.xlu0 %v1444_v40, %s1799_s17 }
 0x66b   : > { %v1446_v42 = vpop.eup %1445 }
 0x66c   : > { %v768_v43 = vadd.f32 1.0, %v1446_v42 }
 0x66e   : > { %1447 = vrcp.f32 %v768_v43  ;;  %v780_v49 = vand.u32 2147483648, %v768_v43  ;;  %vm774_vm13 = vweird.f32 %v768_v43  ;;  %v778_v50 = vand.u32 2147483647, %v768_v43 }
 0x670   : > { %v781_v52 = vor.u32 1.1754944e-38, %v780_v49  ;;  %vm779_vm15 = vcmp.eq.f32.partialorder %v778_v50, 8.507059e+37 }
 0x674   : > { %v1448_v44 = vpop.eup %1447 }
 0x675   : > { %v770_v45 = vmul.f32 %v1448_v44, %v768_v43  ;;  %vm775_vm12 = vweird.f32 %v1448_v44 }
 0x676   : > { %vm776_vm14 = vmor %vm774_vm13, %vm775_vm12 }
 0x677   : > { %v771_v46 = vsub.f32 1.0, %v770_v45 }
 0x679   : > { %v772_v47 = vmul.f32 %v1448_v44, %v771_v46 }
 0x67b   : > { %v773_v48 = vadd.f32 %v1448_v44, %v772_v47 }
 0x67d   : > { %v777_v51 = vsel %vm776_vm14, %v1448_v44, %v773_v48 }
 0x67e   : > { %v782_v54 = vsel %vm779_vm15, %v781_v52, %v777_v51 }
 0x67f   : > { %v789_v57 = vmul.f32 %v787_v56, %v782_v54 }
 0x6dc   : > { %v792_v53 = vpop.permute.xlu0 %791 }
 0x6dd   : > { %v794_v55 = vmul.f32 %v792_v53, %v782_v54 }
 0x6df   : > { %796 = vrot.lane.b32.xlu2 %v794_v55, %s1800_s28 }
 0x739   : > { %v797_v58 = vpop.permute.xlu2 %796 }
 0x73a   : > { %v799_v59 = vadd.f32 %v797_v58, %v789_v57 }
 0x73c   : > { %1449 = vtanh.f32 %v799_v59  ;;  %817 = vrot.lane.b32.xlu2 %v799_v59, %s1801_s4 }
 0x742   : > { %v1450_v60 = vpop.eup %1449 }
 0x743   : > { %802 = vrot.lane.b32.xlu0 %v1450_v60, %s1799_s17 }
 0x796   : > { %v818_v1 = vpop.permute.xlu2 %817 }
 0x797   : > { %v820_v2 = vsel %vm807_vm0, %v818_v1, %v731_v33 }
 0x7b5   : > { %v803_v61 = vpop.permute.xlu0 %802 }
 0x7b6   : > { %v805_v62 = vmul.f32 %v803_v61, %v782_v54 }
 0x7b8   : > { %809 = vrot.lane.b32.xlu1 %v805_v62, %s1800_s28 }
 0x7c0   : > { %874 = vrot.lane.b32.xlu1 %v820_v2, %s1800_s28 }
 0x82a   : > { %v810_v3 = vpop.permute.xlu1 %809 }
 0x82b   : > { %v812_v4 = vsel %vm807_vm0, %v810_v3, 0.0  ;;  %v2246_v5 = vsel %vm807_vm0, %v810_v3, %v726_v36 }
 0x82c   : > { %814 = vst.msk [vmem:[%s813_s1] sm:$0xff] %vm563_vm1, %v812_v4  ;;  %1246 = vmatmul.msk.f32.vlgmr.msrb.gmra.mxu1 %vm563_vm1, %v2246_v5 }
 0x832   : > { %v875_v25 = vpop.permute.xlu1 %874 }
 0x8a9   : > { %v850_v7 = vpop.f32.mrf.mxu1 }
 0x8aa   : > { %v851_v8 = vadd.f32 %v850_v7, %v829_v6 }
 0x8ac   : > { %1451 = vtanh.f32 %v851_v8  ;;  %v1247_v10 = vmul.f32 -1.442695, %v851_v8 }
 0x8ae   : > { %1453 = vpow2.f32 %v1247_v10 }
 0x8b2   : > { %v1452_v9 = vpop.eup %1451 }
 0x8b3   : > { %879 = vrot.lane.b32.xlu0 %v1452_v9, %s1799_s17 }
 0x8b4   : > { %v1454_v11 = vpop.eup %1453 }
 0x8b5   : > { %v856_v12 = vadd.f32 1.0, %v1454_v11 }
 0x8b7   : > { %1455 = vrcp.f32 %v856_v12  ;;  %v868_v18 = vand.u32 2147483648, %v856_v12  ;;  %vm862_vm3 = vweird.f32 %v856_v12  ;;  %v866_v19 = vand.u32 2147483647, %v856_v12 }
 0x8b9   : > { %v869_v21 = vor.u32 1.1754944e-38, %v868_v18  ;;  %vm867_vm5 = vcmp.eq.f32.partialorder %v866_v19, 8.507059e+37 }
 0x8bd   : > { %v1456_v13 = vpop.eup %1455 }
 0x8be   : > { %v858_v14 = vmul.f32 %v1456_v13, %v856_v12  ;;  %vm863_vm2 = vweird.f32 %v1456_v13 }
 0x8bf   : > { %vm864_vm4 = vmor %vm862_vm3, %vm863_vm2 }
 0x8c0   : > { %v859_v15 = vsub.f32 1.0, %v858_v14 }
 0x8c2   : > { %v860_v16 = vmul.f32 %v1456_v13, %v859_v15 }
 0x8c4   : > { %v861_v17 = vadd.f32 %v1456_v13, %v860_v16 }
 0x8c6   : > { %v865_v20 = vsel %vm864_vm4, %v1456_v13, %v861_v17 }
 0x8c7   : > { %v870_v23 = vsel %vm867_vm5, %v869_v21, %v865_v20 }
 0x8c8   : > { %v877_v26 = vmul.f32 %v875_v25, %v870_v23 }
 0x925   : > { %v880_v22 = vpop.permute.xlu0 %879 }
 0x926   : > { %v882_v24 = vmul.f32 %v880_v22, %v870_v23 }
 0x928   : > { %884 = vrot.lane.b32.xlu2 %v882_v24, %s1800_s28 }
 0x982   : > { %v885_v27 = vpop.permute.xlu2 %884 }
 0x983   : > { %v887_v28 = vadd.f32 %v885_v27, %v877_v26 }
 0x985   : > { %1457 = vtanh.f32 %v887_v28  ;;  %905 = vrot.lane.b32.xlu2 %v887_v28, %s1801_s4  ;;  %s930_s4 = smul.u32 %s2516_s12, %s2182_s3 }
 0x98b   : > { %v1458_v29 = vpop.eup %1457 }
 0x98c   : > { %890 = vrot.lane.b32.xlu0 %v1458_v29, %s1799_s17  ;;  %s931_s17 = ssub.s32 1, %s2516_s12  ;;  %s2519_s12 = smul.u32 24, %s2182_s3 }
 0x98d   : > { %s932_s10 = smul.u32 %s2515_s23, %s931_s17  ;;  %s2520_s23 = sld [smem:[#allocation45_spill]] }
 0x98e   : > { %s901_s17 = scalar_lea.vmem %s2146_s20, %s2519_s12 [#allocation11] }
 0x98f   : > { %s933_s1 = sadd.s32 %s932_s10, %s930_s4 }
 0x990   : > { %s1251_s30 = sshll.u32 %s933_s1, 2  ;;  %s2521_s1 = sld [smem:[#allocation28_spill]] }
 0x991   : > { %s938_s24 = sadd.s32 %s1252_s25, %s1251_s30 }
 0x992   : > { %s1253_s21 = sshll.u32 %s938_s24, 3  ;;  %s941_s24 = sshll.u32 %s2146_s20, 4  ;;  %s2301_s24 = int_to_ptr.vmem [resolvable:$true] %s941_s24 }
 0x993   : > { %s940_s19 = scalar_lea.hbm %s2517_s15, %s1253_s21  ;;  %s970_s30 = scalar_lea.hbm %s2520_s23, %s1252_s25 }
 0x994   : > { %s943_s13 = sshll.u32 %s940_s19, 4  ;;  %s972_s19 = sshll.u32 %s2154_s8, 4  ;;  %s2288_s13 = int_to_ptr.hbm [resolvable:$true] %s943_s13  ;;  %s2305_s19 = int_to_ptr.vmem [resolvable:$true] %s972_s19 }
 0x995   : > { %s2293_s7 = sshll.u32 %s970_s30, 4  ;;  %s975_s7 = int_to_ptr.hbm [resolvable:$true] %s2293_s7 }
 0x996   : > { %s2523_s16 = sand.u32 1, %s2521_s1  }
 0x997   : > { %s2310_s20 = scalar_lea.sflag [#allocation13], %s2523_s16 }
 0x9df   : > { %v906_v31 = vpop.permute.xlu2 %905 }
 0x9e0   : > { %v908_v32 = vsel %vm895_vm6, %v906_v31, %v820_v2 }
 0x9e1   : > { %910 = vst.msk [vmem:[%s2154_s8] sm:$0xff] %vm563_vm1, %v908_v32  ;;  %s1593_s8 = sshra.s32 %s961_s5, 4  ;;  %s1594_s8 = int_to_ptr.hbm [resolvable:$true] %s1593_s8 }
 0x9e2   : > { %s1595_s3 = scalar_lea.hbm %s1594_s8, 8  ;;  %p1600_p3 = scmp.lt.s32.totalorder %s1594_s8, %s2518_s2 }
 0x9e3   : > { %p1596_p1 = scmp.ne.s32.totalorder %s1594_s8, %s1595_s3  ;;  %p1601_p2 = scmp.lt.s32.totalorder %s1599_s22, %s1595_s3 }
 0x9e5   : > { %p1597_p7 = pnand %p1596_p1, %p1981_p5  ;;  %p1602_p10 = por %p1601_p2, %p1600_p3 }
 0x9e7   : > { %p1598_p12 = pneg %p1597_p7 }
 0x9e9   : > { %p1603_p8 = pnand %p1602_p10, %p1598_p12 }
 0x9fe   : > { %v891_v33 = vpop.permute.xlu0 %890 }
 0x9ff   : > { %v893_v34 = vmul.f32 %v891_v33, %v870_v23 }
 0xa01   : > { %897 = vrot.lane.b32.xlu1 %v893_v34, %s1800_s28  ;;  %s958_s28 = sshll.u32 %s2150_s6, 4  ;;  %s959_s28 = int_to_ptr.vmem [resolvable:$true] %s958_s28 }
 0xa73   : > { %v898_v35 = vpop.permute.xlu1 %897 }
 0xa74   : > { %v900_v36 = vsel %vm895_vm6, %v898_v35, 0.0  ;;  %v903_v37 = vsel %vm895_vm6, %v898_v35, %v2246_v5 }
 0xa75   : > { %902 = vst.msk [vmem:[%s901_s17] sm:$0xff] %vm563_vm1, %v900_v36 }
 0xa76   : > { %909 = vst.msk [vmem:[%s2150_s6] sm:$0xff] %vm563_vm1, %v903_v37 }
 0xa77   : > { %1606 = shalt.err (!%p1603_p8)
}
 0xa78   : > { %s2524_s6 = sld [smem:[#allocation21_spill]]  ;;  %s1621_s1 = sshra.s32 %s2288_s13, 4  ;;  %s1622_s1 = int_to_ptr.hbm [resolvable:$true] %s1621_s1 }
 0xa79   : > { %1272 = dma.vmem_to_hbm [thread:$0]  (%p1981_p5), %s959_s28, 128, %s961_s5, %s2310_s20  }
 0xa7a   : > { %s1623_s30 = scalar_lea.hbm %s1622_s1, 32  ;;  %s1627_s3 = scalar_lea.hbm %s2517_s15, 128 }
 0xa7b   : > { %p1624_p4 = scmp.ne.s32.totalorder %s1622_s1, %s1623_s30  ;;  %p1628_p11 = scmp.lt.s32.totalorder %s1622_s1, %s2517_s15 }
 0xa7c   : > { %p1629_p1 = scmp.lt.s32.totalorder %s1627_s3, %s1623_s30 }
 0xa7d   : > { %p1625_p6 = pnand %p1624_p4, %p1972_p13 }
 0xa7e   : > { %s2526_s4 = sand.u32 1, %s2524_s6   ;;  %p1630_p7 = por %p1629_p1, %p1628_p11 }
 0xa7f   : > { %s912_s10 = scalar_lea.sflag [#allocation5], %s2526_s4  ;;  %p1626_p9 = pneg %p1625_p6 }
 0xa81   : > { %p1631_p12 = pnand %p1630_p7, %p1626_p9 }
 0xa83   : > { %1634 = shalt.err (!%p1631_p12)
}
 0xa84   : > { %s1802_s5 = smov 128   ;;  %s1803_s28 = smov 8  }
 0xa85   : > { %1271 = dma.vmem_to_hbm [thread:$0]  (%p1972_p13), %s2301_s24, 512, %s2288_s13, %s912_s10, %s1802_s5, %s1802_s5, %s1803_s28  }
 0xa86   : > { %s1649_s22 = sshra.s32 %s975_s7, 4  ;;  %s1655_s4 = scalar_lea.hbm %s2520_s23, 16  ;;  %s1650_s22 = int_to_ptr.hbm [resolvable:$true] %s1649_s22 }
 0xa87   : > { %s1651_s11 = scalar_lea.hbm %s1650_s22, 8  ;;  %p1656_p8 = scmp.lt.s32.totalorder %s1650_s22, %s2520_s23 }
 0xa88   : > { %p1652_p3 = scmp.ne.s32.totalorder %s1650_s22, %s1651_s11  ;;  %p1657_p4 = scmp.lt.s32.totalorder %s1655_s4, %s1651_s11 }
 0xa8a   : > { %p1653_p2 = pnand %p1652_p3, %p1981_p5  ;;  %p1658_p6 = por %p1657_p4, %p1656_p8 }
 0xa8c   : > { %p1654_p10 = pneg %p1653_p2 }
 0xa8e   : > { %p1659_p9 = pnand %p1658_p6, %p1654_p10 }
 0xa90   : > { %1662 = shalt.err (!%p1659_p9)
}
 0xa91   : > { %1273 = dma.vmem_to_hbm [thread:$0]  (%p1981_p5), %s2305_s19, 128, %s975_s7, %s2310_s20  }
 0xa92 PF: > { %s2527_s13 = sld [smem:[#allocation20_spill]]  ;;  %p1304_p13 = scmp.ge.s32.totalorder %s1793_s14, 2 }
 0xa94   : > { %p1292_p11 = pnand %p1304_p13, %p1986_p0 }
 0xa96   : > { %p1293_p1 = pneg %p1292_p11 }
 0xa98   : > { %s986_s17 = sand.u32 1, %s2527_s13  }
 0xa99   : > { %s987_s10 = scalar_lea.sflag [#allocation5], %s986_s17 }
 0xa9a   : > { %1732 = dma.done.wait (%p1293_p1), %s987_s10, 512  }
 0xa9b   : > { %1734 = vsyncadd (%p1293_p1), %s987_s10, 4294966784  ;;  %s2529_s16 = sadd.s32 4294967294, %s1793_s14   ;;  %s2530_s0 = sld [smem:[#allocation34_spill]] }
 0xa9c   : > { %s996_s8 = sand.u32 1, %s2529_s16  }
 0xa9d   : > { %s997_s19 = scalar_lea.sflag [#allocation13], %s996_s8 }
 0xaa1   : > { %p2531_p7 = scmp.ne.s32.totalorder %s2530_s0, 0 }
 0xaa3   : > { %p1295_p12 = pnand %p1304_p13, %p2531_p7 }
 0xaa5   : > { %p1296_p3 = pneg %p1295_p12 }
 0xaa7   : > { %1736 = dma.done.wait (%p1296_p3), %s997_s19, 256  }
 0xaa8   : > { %1738 = vsyncadd (%p1296_p3), %s997_s19, 4294967040  ;;  %s31_s14 = sadd.s32 1, %s1793_s14   ;;  %s2533_s24 = sld [smem:[#allocation21_spill]] }
 0xaa9   : > { %p2363_p5 = scmp.ge.s32.totalorder %s31_s14, 6   ;;  %s2534_s20 = sld [smem:[#allocation22_spill]] }
 0xaaa   : > { %s2535_s3 = smov %s2036_s27  ;;  %s2536_s30 = sld [smem:[#allocation23_spill]] }
 0xaab   : > { %s2537_s21 = sld [smem:[#allocation37_spill]]  ;;  %s2542_s25 = smov %s1749_s26 }
 0xaac   : > { %s2538_s10 = sld [smem:[#allocation26_spill]]  ;;  %s2543_s26 = smov %s2043_s18 }
 0xaad   : > { %s2539_s11 = sld [smem:[#allocation27_spill]]  ;;  %s2545_s28 = smov %s1761_s29 }
 0xaae   : > { %s2540_s12 = sld [smem:[#allocation35_spill]]  ;;  %s2546_s29 = smov %s2535_s3 }
 0xaaf   : > { %s2541_s13 = sld [smem:[#allocation36_spill]]  ;;  %s2544_s27 = smov %s2534_s20 }
 0xab0   : > { %s2547_s8 = smov %s1773_s9  ;;  %30 = sbr.rel (!%p2363_p5) target bundleno = 24 (0x18), region = 160 }
 0xab1   : > { %s2548_s9 = smov %s2537_s21 }
 0xab5   :  { %1013 = vsyncpa [#allocation4], 1 }
 0xab6   :  { %1015 = vsyncpa [#allocation4 + $0x1], 1 }
 0xab7   :  { %1016 = vsyncpa [#allocation7], 1 }
 0xab8   :  { %1018 = vsyncpa [#allocation7 + $0x1], 1 }
 0xab9   :  { %1019 = vsyncpa [#allocation10], 1 }
 0xaba   :  { %1020 = vsyncpa [#allocation5], 1 }
 0xabb   :  { %1022 = vsyncpa [#allocation5 + $0x1], 1 }
 0xabc   :  { %1023 = vsyncpa [#allocation13], 1 }
 0xabd   :  { %1025 = vsyncpa [#allocation13 + $0x1], 1 }

</bundles_post_ra>
